<compile_context>
chip_gen: v5e
topology: v5e:2x2
jax: 0.10.0
libtpu: 0.0.40
codegen_flags: <defaults>
</compile_context>

<pallas_src>
import functools

import jax
import jax.numpy as jnp
from jax import lax
from jax.experimental import pallas as pl
from jax.experimental.pallas import tpu as pltpu

_NEG_INF = -1e30  # finite "minus infinity" so masked tiles never produce NaN


# ---------------------------------------------------------------------------
# Helpers: generation-aware tile config + padding
# ---------------------------------------------------------------------------
def _round_up(x, m):
    return ((x + m - 1) // m) * m


def _pad_to(x, shape):
    pads = [(0, s - d) for d, s in zip(x.shape, shape)]
    if any(p[1] for p in pads):
        x = jnp.pad(x, pads)
    return x


def _pick_divisor_tile(n, target, multiple):
    """Largest t <= min(target, n) with t % multiple == 0 and n % t == 0."""
    t = min(target, n)
    t -= t % multiple
    while t >= multiple:
        if n % t == 0:
            return t
        t -= multiple
    return None


class _TileConfig:
    def __init__(self, tile_new, tile_orig, max_tile_b, tile_k, tile_n,
                 vmem_limit, num_d_splits):
        self.tile_new = tile_new        # Kernel-1 M tile (target; >= MXU width)
        self.tile_orig = tile_orig      # Kernel-1 reduction tile target
        self.max_tile_b = max_tile_b    # Kernels 2a/2b batch tile cap
        self.tile_k = tile_k            # Kernel-2a reduction tile
        self.tile_n = tile_n            # Kernel-2b output-column tile
        self.vmem_limit = vmem_limit
        self.num_d_splits = num_d_splits  # Kernel-2a parallel d split (v7x)


def _tile_config():
    kind = ""
    try:
        kind = jax.devices()[0].device_kind.lower()
    except Exception:
        pass
    if "v7" in kind:
        # 64 MiB VMEM / TC but the halved tiles were over-conservative:
        # un-halved reduction tiles stay well under the 48 MiB scoped limit.
        # Two TensorCores -> split Kernel-2a's d output dim across them.
        return _TileConfig(tile_new=640, tile_orig=2048, max_tile_b=1024,
                           tile_k=4096, tile_n=2048,
                           vmem_limit=48 * 1024 * 1024, num_d_splits=2)
    if "v6" in kind:
        return _TileConfig(tile_new=640, tile_orig=2048, max_tile_b=1024,
                           tile_k=4096, tile_n=2048,
                           vmem_limit=100 * 1024 * 1024, num_d_splits=1)
    if "v5" in kind or "v4" in kind:
        # v5e has the slowest HBM (~0.82 TB/s) so large M tiles matter most:
        # the MXU simply loops over M, so big M tiles are free and directly
        # cut the E / combined_W re-streaming traffic.
        return _TileConfig(tile_new=640, tile_orig=2048, max_tile_b=1024,
                           tile_k=4096, tile_n=2048,
                           vmem_limit=100 * 1024 * 1024, num_d_splits=1)
    # Unknown generation: conservative tiles, default scoped VMEM limit.
    return _TileConfig(tile_new=256, tile_orig=512, max_tile_b=256,
                       tile_k=1024, tile_n=512, vmem_limit=None,
                       num_d_splits=1)


# ---------------------------------------------------------------------------
# Kernel 1: fused  softmax(A1 @ A2) @ E  with online softmax over `orig`
# ---------------------------------------------------------------------------
def _softmax_lowrank_embed_kernel(a1_ref, a2_ref, e_ref, out_ref,
                                  m_sc, l_sc, acc_sc, *,
                                  orig_size, tile_orig, mask_cols,
                                  transpose_out):
    k = pl.program_id(1)

    @pl.when(k == 0)
    def _init():
        m_sc[...] = jnp.full_like(m_sc, _NEG_INF)
        l_sc[...] = jnp.zeros_like(l_sc)
        acc_sc[...] = jnp.zeros_like(acc_sc)

    # (tile_new, tile_orig) logits for this vocabulary slice (f32 accumulation).
    logits = jnp.dot(a1_ref[...], a2_ref[...],
                     preferred_element_type=jnp.float32)

    if mask_cols:
        # Fallback only (tile_orig does not divide orig): mask padded columns.
        # Every tile still contains >= 1 real column (padding < tile_orig), so
        # the running max can never stay at _NEG_INF.
        col = k * tile_orig + lax.broadcasted_iota(jnp.int32, logits.shape, 1)
        logits = jnp.where(col < orig_size, logits, _NEG_INF)

    m_prev = m_sc[...]
    m_new = jnp.maximum(m_prev, jnp.max(logits, axis=-1, keepdims=True))
    alpha = jnp.exp(m_prev - m_new)              # rescale of previous partials
    p = jnp.exp(logits - m_new)                  # f32 elementwise (v5e-safe)

    l_sc[...] = alpha * l_sc[...] + jnp.sum(p, axis=-1, keepdims=True)
    acc_sc[...] = alpha * acc_sc[...] + jnp.dot(
        p.astype(e_ref.dtype), e_ref[...], preferred_element_type=jnp.float32)
    m_sc[...] = m_new

    @pl.when(k == pl.num_programs(1) - 1)
    def _finalize():
        inv = pl.reciprocal(l_sc[...], approx=True)   # EUP, frees VALU slots
        res = acc_sc[...] * inv
        if transpose_out:
            # Transposed output block (d, tile_new): cheap per-tile XLU work
            # that removes the big HBM transpose of combined_V.
            out_ref[...] = jnp.transpose(res).astype(out_ref.dtype)
        else:
            out_ref[...] = res.astype(out_ref.dtype)


def softmax_lowrank_embed(a1, a2, e, *, tile_new=None, tile_orig=None,
                          transpose_out=False, trim=True):
    """softmax(a1 @ a2, axis=-1) @ e.

    If transpose_out, returns the transposed result with shape (d, new_rows).
    If trim is False, the new-rows axis stays padded to a tile_new multiple
    (the padded rows hold finite values and are harmless when matched with
    zero-padded X columns downstream).
    """
    new_size, fdim = a1.shape
    orig, d = e.shape
    assert a2.shape == (fdim, orig)

    cfg = _tile_config()

    tile_new = tile_new or cfg.tile_new
    tile_new = min(tile_new, _round_up(new_size, 128))
    tile_new = max(128, tile_new - tile_new % 128)
    new_p = _round_up(new_size, tile_new)

    if tile_orig is None:
        tile_orig = _pick_divisor_tile(orig, cfg.tile_orig, 128)
        if tile_orig is None:                       # no dividing tile exists
            tile_orig = min(cfg.tile_orig, _round_up(orig, 128))
    else:
        tile_orig = min(tile_orig, _round_up(orig, 128))
        tile_orig = max(128, tile_orig - tile_orig % 128)
    mask_cols = (orig % tile_orig) != 0
    orig_p = _round_up(orig, tile_orig)

    a1p = _pad_to(a1.astype(jnp.bfloat16), (new_p, fdim))
    a2p = _pad_to(a2.astype(jnp.bfloat16), (fdim, orig_p))
    ep = _pad_to(e.astype(jnp.bfloat16), (orig_p, d))

    grid = (new_p // tile_new, orig_p // tile_orig)
    n_new_tiles = grid[0]

    kernel = functools.partial(
        _softmax_lowrank_embed_kernel, orig_size=orig, tile_orig=tile_orig,
        mask_cols=mask_cols, transpose_out=transpose_out)

    if transpose_out:
        out_shape = jax.ShapeDtypeStruct((d, new_p), jnp.bfloat16)
        out_spec = pl.BlockSpec((d, tile_new), lambda i, k: (0, i))
    else:
        out_shape = jax.ShapeDtypeStruct((new_p, d), jnp.bfloat16)
        out_spec = pl.BlockSpec((tile_new, d), lambda i, k: (i, 0))

    out = pl.pallas_call(
        kernel,
        out_shape=out_shape,
        grid_spec=pltpu.PrefetchScalarGridSpec(
            num_scalar_prefetch=0,
            grid=grid,
            in_specs=[
                pl.BlockSpec((tile_new, fdim), lambda i, k: (i, 0)),
                pl.BlockSpec((fdim, tile_orig), lambda i, k: (0, k)),
                pl.BlockSpec((tile_orig, d), lambda i, k: (k, 0)),
            ],
            out_specs=out_spec,
            scratch_shapes=[
                pltpu.VMEM((tile_new, 1), jnp.float32),   # running max
                pltpu.VMEM((tile_new, 1), jnp.float32),   # running denom
                pltpu.VMEM((tile_new, d), jnp.float32),   # partial probs @ E
            ],
        ),
        compiler_params=pltpu.CompilerParams(
            dimension_semantics=("parallel", "arbitrary"),
            vmem_limit_bytes=cfg.vmem_limit,
        ),
        cost_estimate=pl.CostEstimate(
            flops=2 * new_p * orig_p * (fdim + d),
            transcendentals=new_p * orig_p,
            bytes_accessed=2 * (new_p * fdim + new_p * d
                                + n_new_tiles * orig_p * (fdim + d)),
        ),
    )(a1p, a2p, ep)

    if trim:
        out = out[:, :new_size] if transpose_out else out[:new_size]
    return out


# ---------------------------------------------------------------------------
# Kernel 2a: hidden = X @ combined_W   (vocab axis tiled as reduction,
#                                       optional parallel d split for v7x)
# ---------------------------------------------------------------------------
def _xw_hidden_kernel(x_ref, w_ref, o_ref, acc_ref):
    @pl.when(pl.program_id(2) == 0)
    def _init():
        acc_ref[...] = jnp.zeros_like(acc_ref)

    acc_ref[...] += jnp.dot(x_ref[...], w_ref[...],
                            preferred_element_type=jnp.float32)

    @pl.when(pl.program_id(2) == pl.num_programs(2) - 1)
    def _finalize():
        o_ref[...] = acc_ref[...].astype(o_ref.dtype)


# ---------------------------------------------------------------------------
# Kernel 2b: out = hidden @ V_T   (lane-dense output columns of the vocab)
# ---------------------------------------------------------------------------
def _hv_output_kernel(h_ref, vt_ref, o_ref):
    o_ref[...] = jnp.dot(h_ref[...], vt_ref[...],
                         preferred_element_type=jnp.float32).astype(o_ref.dtype)


def w2v_forward(x, w_parts, vt_parts, *, tile_b=None, tile_k=None,
                tile_n=None, num_d_splits=None, out_dtype=jnp.float32):
    """(X @ concat(w_parts, axis=0)) @ concat(vt_parts, axis=1).

    w_parts rows / vt_parts columns beyond X's width may be padding; they are
    neutralized by zero-padded X columns (Kernel 2a) or sliced off (Kernel 2b).
    """
    b, total = x.shape
    d = w_parts[0].shape[1]
    rows = sum(p.shape[0] for p in w_parts)
    cols = sum(p.shape[1] for p in vt_parts)
    assert rows >= total and cols >= total
    assert all(p.shape[1] == d for p in w_parts)
    assert all(p.shape[0] == d for p in vt_parts)

    cfg = _tile_config()
    tile_k = tile_k or cfg.tile_k
    tile_n = tile_n or cfg.tile_n
    num_d_splits = num_d_splits or cfg.num_d_splits
    if d % (128 * num_d_splits) != 0:
        num_d_splits = 1
    d_tile = d // num_d_splits

    # Batch tile covers the whole (padded) batch up to a per-gen VMEM cap, so
    # combined_W / combined_V_T are streamed once instead of ceil(B/tile_b)x.
    b_r = _round_up(b, 8)
    tile_b = tile_b or min(cfg.max_tile_b, b_r)
    tile_b = min(max(8, tile_b - tile_b % 8), b_r)
    b_p = _round_up(b, tile_b)

    tile_k = min(max(128, tile_k - tile_k % 128), _round_up(rows, 128))
    tile_n = min(max(128, tile_n - tile_n % 128), _round_up(cols, 128))
    k_p = _round_up(rows, tile_k)
    n_p = _round_up(cols, tile_n)

    # One concatenate each, emitting the zero-padded combined buffers directly
    # (no separate concat-then-pad copies).
    w_list = [p.astype(jnp.bfloat16) for p in w_parts]
    if k_p > rows:
        w_list.append(jnp.zeros((k_p - rows, d), jnp.bfloat16))
    combined_w = jnp.concatenate(w_list, axis=0) if len(w_list) > 1 else w_list[0]

    vt_list = [p.astype(jnp.bfloat16) for p in vt_parts]
    if n_p > cols:
        vt_list.append(jnp.zeros((d, n_p - cols), jnp.bfloat16))
    combined_vt = (jnp.concatenate(vt_list, axis=1)
                   if len(vt_list) > 1 else vt_list[0])

    xp = _pad_to(x.astype(jnp.bfloat16), (b_p, k_p))

    hidden = pl.pallas_call(
        _xw_hidden_kernel,
        out_shape=jax.ShapeDtypeStruct((b_p, d), jnp.bfloat16),
        grid_spec=pltpu.PrefetchScalarGridSpec(
            num_scalar_prefetch=0,
            grid=(b_p // tile_b, num_d_splits, k_p // tile_k),
            in_specs=[
                pl.BlockSpec((tile_b, tile_k), lambda i, dj, k: (i, k)),
                pl.BlockSpec((tile_k, d_tile), lambda i, dj, k: (k, dj)),
            ],
            out_specs=pl.BlockSpec((tile_b, d_tile), lambda i, dj, k: (i, dj)),
            scratch_shapes=[pltpu.VMEM((tile_b, d_tile), jnp.float32)],
        ),
        compiler_params=pltpu.CompilerParams(
            dimension_semantics=("parallel", "parallel", "arbitrary"),
            vmem_limit_bytes=cfg.vmem_limit,
        ),
        cost_estimate=pl.CostEstimate(
            flops=2 * b_p * k_p * d,
            transcendentals=0,
            bytes_accessed=2 * (num_d_splits * b_p * k_p + k_p * d + b_p * d),
        ),
    )(xp, combined_w)

    out = pl.pallas_call(
        _hv_output_kernel,
        out_shape=jax.ShapeDtypeStruct((b_p, n_p), out_dtype),
        grid_spec=pltpu.PrefetchScalarGridSpec(
            num_scalar_prefetch=0,
            grid=(b_p // tile_b, n_p // tile_n),
            in_specs=[
                pl.BlockSpec((tile_b, d), lambda i, j: (i, 0)),
                pl.BlockSpec((d, tile_n), lambda i, j: (0, j)),
            ],
            out_specs=pl.BlockSpec((tile_b, tile_n), lambda i, j: (i, j)),
        ),
        compiler_params=pltpu.CompilerParams(
            dimension_semantics=("parallel", "parallel"),
            vmem_limit_bytes=cfg.vmem_limit,
        ),
        cost_estimate=pl.CostEstimate(
            flops=2 * b_p * d * n_p,
            transcendentals=0,
            bytes_accessed=2 * (b_p * d + d * n_p)
            + jnp.dtype(out_dtype).itemsize * b_p * n_p,
        ),
    )(hidden, combined_vt)

    return out[:b, :total]


# ---------------------------------------------------------------------------
# Word2Vec module (purely-functional forward; no state mutation in __call__)
# ---------------------------------------------------------------------------
class Word2VecPallas:
    def __init__(self, W_init, V_init, *, new_size, factorized_dim, key):
        self.original_size, self.embedding_dim = W_init.shape
        self.new_size = new_size
        self.factorized_dim = factorized_dim

        # Matmul operands are stored in bf16 (f32 accumulation inside kernels).
        self.W_original = jnp.asarray(W_init, jnp.bfloat16)
        self.V_original = jnp.asarray(V_init, jnp.bfloat16)
        # V_original is a frozen constant: transpose it exactly once so the
        # output matmul never needs a per-call (total, d) -> (d, total) copy.
        self.V_original_T = jnp.asarray(V_init, jnp.bfloat16).T

        k1, k2, k3, k4 = jax.random.split(key, 4)
        # torch.rand -> uniform [0, 1)
        self.A_W_1 = jax.random.uniform(k1, (new_size, factorized_dim)).astype(jnp.bfloat16)
        self.A_W_2 = jax.random.uniform(k2, (factorized_dim, self.original_size)).astype(jnp.bfloat16)
        self.A_V_1 = jax.random.uniform(k3, (new_size, factorized_dim)).astype(jnp.bfloat16)
        self.A_V_2 = jax.random.uniform(k4, (factorized_dim, self.original_size)).astype(jnp.bfloat16)

    def __call__(self, X, *, tile_new=None, tile_orig=None, tile_b=None,
                 tile_k=None, tile_n=None, num_d_splits=None,
                 out_dtype=jnp.float32):
        X = jnp.asarray(X, jnp.bfloat16)

        # Kernel-1 outputs stay padded (trim=False): the padded tail rows /
        # columns are neutralized downstream (zero X columns / output slice),
        # avoiding a slice + re-pad round-trip over the ~64 MB arrays.
        new_W = softmax_lowrank_embed(self.A_W_1, self.A_W_2, self.W_original,
                                      tile_new=tile_new, tile_orig=tile_orig,
                                      trim=False)
        # Transposed-output variant: writes (d, tile_new) blocks so combined
        # V^T needs no separate HBM transpose.
        new_V_T = softmax_lowrank_embed(self.A_V_1, self.A_V_2, self.V_original,
                                        tile_new=tile_new, tile_orig=tile_orig,
                                        transpose_out=True, trim=False)

        # TODO(synk): the remaining two concats (inside w2v_forward) still copy
        # ~2 x 130 MB of HBM at the real shapes; they can be removed by writing
        # Kernel-1 output directly into the tail blocks of a preallocated
        # combined buffer via input_output_aliases, but that only pays off when
        # the whole forward is jitted with genuine buffer donation (otherwise
        # XLA inserts a defensive copy of the template costing the same).
        return w2v_forward(X, (self.W_original, new_W),
                           (self.V_original_T, new_V_T),
                           tile_b=tile_b, tile_k=tile_k, tile_n=tile_n,
                           num_d_splits=num_d_splits, out_dtype=out_dtype)


# ---------------------------------------------------------------------------
# Reference (pure jnp, precision-matched: bf16 operands, f32 accumulation)
# ---------------------------------------------------------------------------
def _reference_forward(X, W_orig, V_orig, A_W_1, A_W_2, A_V_1, A_V_2):
    f32 = jnp.float32

    def lowrank(a1, a2, e):
        logits = jnp.dot(a1, a2, preferred_element_type=f32)
        probs = jax.nn.softmax(logits, axis=-1)
        return jnp.dot(probs.astype(e.dtype), e,
                       preferred_element_type=f32).astype(jnp.bfloat16)

    new_W = lowrank(A_W_1, A_W_2, W_orig)
    new_V = lowrank(A_V_1, A_V_2, V_orig)
    comb_W = jnp.concatenate([W_orig, new_W], axis=0)
    comb_V = jnp.concatenate([V_orig, new_V], axis=0)
    hidden = jnp.dot(X, comb_W, preferred_element_type=f32).astype(jnp.bfloat16)
    return jnp.dot(hidden, comb_V.T, preferred_element_type=f32)


if __name__ == "__main__":
    # Small synthetic shapes (the real module uses 32000 / 31199 / 1024).
    ORIGINAL_SIZE = 384
    NEW_SIZE = 250            # deliberately not a tile multiple: tests padding
    FACTORIZED_DIM = 128
    EMBED_DIM = 256           # lets the toy run exercise the d-split grid path
    BATCH = 64
    TOTAL = ORIGINAL_SIZE + NEW_SIZE

    root = jax.random.PRNGKey(0)
    k_w, k_v, k_x, k_params = jax.random.split(root, 4)

    W_init = jax.random.normal(k_w, (ORIGINAL_SIZE, EMBED_DIM), jnp.float32) * 0.02
    V_init = jax.random.normal(k_v, (ORIGINAL_SIZE, EMBED_DIM), jnp.float32) * 0.02
    X = jax.random.uniform(k_x, (BATCH, TOTAL), jnp.float32)

    model = Word2VecPallas(
        W_init, V_init, new_size=NEW_SIZE, factorized_dim=FACTORIZED_DIM, key=k_params
    )

    # Small explicit tiles so the toy shapes still exercise multi-step
    # reduction grids (online softmax + K-tiled matmul), multi-tile outputs,
    # padding of the "new" axis, the transposed Kernel-1 output, and the
    # num_d_splits=2 (v7x-style) parallel-d grid in Kernel 2a.
    out = model(X, tile_new=128, tile_orig=128, tile_b=32, tile_k=256,
                tile_n=256, num_d_splits=2)
    out = jax.block_until_ready(out)

    ref = _reference_forward(
        jnp.asarray(X, jnp.bfloat16),
        model.W_original, model.V_original,
        model.A_W_1, model.A_W_2, model.A_V_1, model.A_V_2,
    )
    ref = jax.block_until_ready(ref)

    assert out.shape == (BATCH, TOTAL), out.shape
    max_err = float(jnp.max(jnp.abs(out - ref)))
    assert jnp.allclose(out, ref, rtol=2e-2, atol=1e-2), max_err
    print("KERNEL_OK")
</pallas_src>

<mosaic_0001>
module attributes {stable_mosaic.version = 11 : i64} {
  func.func @_softmax_lowrank_embed_kernel(%arg0: i32, %arg1: i32, %arg2: memref<128x128xbf16, #tpu.memory_space<vmem>>, %arg3: memref<128x128xbf16, #tpu.memory_space<vmem>>, %arg4: memref<128x256xbf16, #tpu.memory_space<vmem>>, %arg5: memref<128x256xbf16, #tpu.memory_space<vmem>>, %arg6: memref<128x1xf32, #tpu.memory_space<vmem>>, %arg7: memref<128x1xf32, #tpu.memory_space<vmem>>, %arg8: memref<128x256xf32, #tpu.memory_space<vmem>>) attributes {dimension_semantics = [#tpu.dimension_semantics<parallel>, #tpu.dimension_semantics<arbitrary>], iteration_bounds = array<i64: 2, 3>, scalar_prefetch = 0 : i64, scratch_operands = 3 : i64, tpu.core_type = #tpu.core_type<tc>, window_params = [{transform_indices = @transform_0, window_bounds = array<i64: 128, 128>}, {transform_indices = @transform_1, window_bounds = array<i64: 128, 128>}, {transform_indices = @transform_2, window_bounds = array<i64: 128, 256>}, {transform_indices = @transform_3, window_bounds = array<i64: 128, 256>}]} {
    %c0_i32 = arith.constant 0 : i32
    %0 = arith.cmpi eq, %arg1, %c0_i32 : i32
    %1 = arith.extui %0 : i1 to i32
    %c0_i32_0 = arith.constant 0 : i32
    %2 = arith.cmpi ne, %1, %c0_i32_0 : i32
    scf.if %2 {
      %cst_22 = arith.constant -1.000000e+30 : f32
      %33 = vector.broadcast %cst_22 : f32 to vector<128x1xf32>
      %c0_23 = arith.constant 0 : index
      %c0_24 = arith.constant 0 : index
      %34 = vector.load %arg6[%c0_23, %c0_24] : memref<128x1xf32, #tpu.memory_space<vmem>>, vector<128x1xf32>
      tpu.vector_store %arg6[%c0_23, %c0_24], %33 {strides = array<i32>} : memref<128x1xf32, #tpu.memory_space<vmem>>, vector<128x1xf32>,
      %cst_25 = arith.constant 0.000000e+00 : f32
      %35 = vector.broadcast %cst_25 : f32 to vector<128x1xf32>
      %c0_26 = arith.constant 0 : index
      %c0_27 = arith.constant 0 : index
      %36 = vector.load %arg7[%c0_26, %c0_27] : memref<128x1xf32, #tpu.memory_space<vmem>>, vector<128x1xf32>
      tpu.vector_store %arg7[%c0_26, %c0_27], %35 {strides = array<i32>} : memref<128x1xf32, #tpu.memory_space<vmem>>, vector<128x1xf32>,
      %cst_28 = arith.constant 0.000000e+00 : f32
      %37 = vector.broadcast %cst_28 : f32 to vector<128x256xf32>
      %c0_29 = arith.constant 0 : index
      %c0_30 = arith.constant 0 : index
      %38 = vector.load %arg8[%c0_29, %c0_30] : memref<128x256xf32, #tpu.memory_space<vmem>>, vector<128x256xf32>
      tpu.vector_store %arg8[%c0_29, %c0_30], %37 {strides = array<i32>} : memref<128x256xf32, #tpu.memory_space<vmem>>, vector<128x256xf32>,
    } else {
    }
    %c0 = arith.constant 0 : index
    %c0_1 = arith.constant 0 : index
    %3 = vector.load %arg2[%c0, %c0_1] : memref<128x128xbf16, #tpu.memory_space<vmem>>, vector<128x128xbf16>
    %c0_2 = arith.constant 0 : index
    %c0_3 = arith.constant 0 : index
    %4 = vector.load %arg3[%c0_2, %c0_3] : memref<128x128xbf16, #tpu.memory_space<vmem>>, vector<128x128xbf16>
    %cst = arith.constant dense<0.000000e+00> : vector<128x128xf32>
    %5 = tpu.matmul %3, %4, %cst {dimension_numbers = #tpu.dot_dimension_numbers<[1], [0], [0], [1], [0, 0, 1, 1], [], []>} : vector<128x128xbf16>, vector<128x128xbf16>, vector<128x128xf32> -> vector<128x128xf32>
    %c0_4 = arith.constant 0 : index
    %c0_5 = arith.constant 0 : index
    %6 = vector.load %arg6[%c0_4, %c0_5] : memref<128x1xf32, #tpu.memory_space<vmem>>, vector<128x1xf32>
    %cst_6 = arith.constant dense<0xFF800000> : vector<128xf32>
    %7 = vector.multi_reduction <maximumf>, %5, %cst_6 [1] : vector<128x128xf32> to vector<128xf32>
    %8 = vector.shape_cast %7 : vector<128xf32> to vector<128x1xf32>
    %9 = arith.maximumf %6, %8 : vector<128x1xf32>
    %10 = arith.subf %6, %9 : vector<128x1xf32>
    %11 = math.exp %10 : vector<128x1xf32>
    %12 = vector.broadcast %9 : vector<128x1xf32> to vector<128x128xf32>
    %13 = arith.subf %5, %12 : vector<128x128xf32>
    %14 = math.exp %13 : vector<128x128xf32>
    %c0_7 = arith.constant 0 : index
    %c0_8 = arith.constant 0 : index
    %15 = vector.load %arg7[%c0_7, %c0_8] : memref<128x1xf32, #tpu.memory_space<vmem>>, vector<128x1xf32>
    %16 = arith.mulf %11, %15 : vector<128x1xf32>
    %cst_9 = arith.constant dense<0.000000e+00> : vector<128xf32>
    %17 = vector.multi_reduction <add>, %14, %cst_9 [1] : vector<128x128xf32> to vector<128xf32>
    %18 = vector.shape_cast %17 : vector<128xf32> to vector<128x1xf32>
    %19 = arith.addf %16, %18 : vector<128x1xf32>
    %c0_10 = arith.constant 0 : index
    %c0_11 = arith.constant 0 : index
    %20 = vector.load %arg7[%c0_10, %c0_11] : memref<128x1xf32, #tpu.memory_space<vmem>>, vector<128x1xf32>
    tpu.vector_store %arg7[%c0_10, %c0_11], %19 {strides = array<i32>} : memref<128x1xf32, #tpu.memory_space<vmem>>, vector<128x1xf32>,
    %c0_12 = arith.constant 0 : index
    %c0_13 = arith.constant 0 : index
    %21 = vector.load %arg8[%c0_12, %c0_13] : memref<128x256xf32, #tpu.memory_space<vmem>>, vector<128x256xf32>
    %22 = vector.broadcast %11 : vector<128x1xf32> to vector<128x256xf32>
    %23 = arith.mulf %22, %21 : vector<128x256xf32>
    %24 = arith.truncf %14 : vector<128x128xf32> to vector<128x128xbf16>
    %c0_14 = arith.constant 0 : index
    %c0_15 = arith.constant 0 : index
    %25 = vector.load %arg4[%c0_14, %c0_15] : memref<128x256xbf16, #tpu.memory_space<vmem>>, vector<128x256xbf16>
    %cst_16 = arith.constant dense<0.000000e+00> : vector<128x256xf32>
    %26 = tpu.matmul %24, %25, %cst_16 {dimension_numbers = #tpu.dot_dimension_numbers<[1], [0], [0], [1], [0, 0, 1, 1], [], []>} : vector<128x128xbf16>, vector<128x256xbf16>, vector<128x256xf32> -> vector<128x256xf32>
    %27 = arith.addf %23, %26 : vector<128x256xf32>
    %c0_17 = arith.constant 0 : index
    %c0_18 = arith.constant 0 : index
    %28 = vector.load %arg8[%c0_17, %c0_18] : memref<128x256xf32, #tpu.memory_space<vmem>>, vector<128x256xf32>
    tpu.vector_store %arg8[%c0_17, %c0_18], %27 {strides = array<i32>} : memref<128x256xf32, #tpu.memory_space<vmem>>, vector<128x256xf32>,
    %c0_19 = arith.constant 0 : index
    %c0_20 = arith.constant 0 : index
    %29 = vector.load %arg6[%c0_19, %c0_20] : memref<128x1xf32, #tpu.memory_space<vmem>>, vector<128x1xf32>
    tpu.vector_store %arg6[%c0_19, %c0_20], %9 {strides = array<i32>} : memref<128x1xf32, #tpu.memory_space<vmem>>, vector<128x1xf32>,
    %c2_i32 = arith.constant 2 : i32
    %30 = arith.cmpi eq, %arg1, %c2_i32 : i32
    %31 = arith.extui %30 : i1 to i32
    %c0_i32_21 = arith.constant 0 : i32
    %32 = arith.cmpi ne, %31, %c0_i32_21 : i32
    scf.if %32 {
      %c0_22 = arith.constant 0 : index
      %c0_23 = arith.constant 0 : index
      %33 = vector.load %arg7[%c0_22, %c0_23] : memref<128x1xf32, #tpu.memory_space<vmem>>, vector<128x1xf32>
      %34 = tpu.reciprocal %33 {approx = true} : vector<128x1xf32> -> vector<128x1xf32>
      %c0_24 = arith.constant 0 : index
      %c0_25 = arith.constant 0 : index
      %35 = vector.load %arg8[%c0_24, %c0_25] : memref<128x256xf32, #tpu.memory_space<vmem>>, vector<128x256xf32>
      %36 = vector.broadcast %34 : vector<128x1xf32> to vector<128x256xf32>
      %37 = arith.mulf %35, %36 : vector<128x256xf32>
      %38 = arith.truncf %37 : vector<128x256xf32> to vector<128x256xbf16>
      %c0_26 = arith.constant 0 : index
      %c0_27 = arith.constant 0 : index
      %39 = vector.load %arg5[%c0_26, %c0_27] : memref<128x256xbf16, #tpu.memory_space<vmem>>, vector<128x256xbf16>
      tpu.vector_store %arg5[%c0_26, %c0_27], %38 {strides = array<i32>} : memref<128x256xbf16, #tpu.memory_space<vmem>>, vector<128x256xbf16>,
    } else {
    }
    return
  }
  func.func @transform_0(%arg0: i32, %arg1: i32) -> (i32, i32) {
    %c0_i32 = arith.constant 0 : i32
    %c0_i32_0 = arith.constant 0 : i32
    return %arg0, %c0_i32 : i32, i32
  }
  func.func @transform_1(%arg0: i32, %arg1: i32) -> (i32, i32) {
    %c0_i32 = arith.constant 0 : i32
    %c0_i32_0 = arith.constant 0 : i32
    return %c0_i32, %arg1 : i32, i32
  }
  func.func @transform_2(%arg0: i32, %arg1: i32) -> (i32, i32) {
    %c0_i32 = arith.constant 0 : i32
    %c0_i32_0 = arith.constant 0 : i32
    return %arg1, %c0_i32 : i32, i32
  }
  func.func @transform_3(%arg0: i32, %arg1: i32) -> (i32, i32) {
    %c0_i32 = arith.constant 0 : i32
    %c0_i32_0 = arith.constant 0 : i32
    return %arg0, %c0_i32 : i32, i32
  }
}

</mosaic_0001>

<bundles_post_ra>
// kernel: tpu_custom_call.1
= control target key start
LH: loop header
LB: loop body
LE: loop exit
PB: predicated region body
PF: predicated region fallthrough
CT: control target
= control target key end

     0   :  { %s3127_s0 = inlined_call_operand.hbm [shape: bf16[256,128], index: 0, kind: input, shape index: {}]   ;;  %s3128_s1 = inlined_call_operand.hbm [shape: bf16[128,384], index: 1, kind: input, shape index: {}]   ;;  %s3129_s2 = inlined_call_operand.hbm [shape: bf16[384,256], index: 2, kind: input, shape index: {}]   ;;  %s3130_s3 = inlined_call_operand.hbm [shape: bf16[256,256], index: 3, kind: output, shape index: {}]  }
   0x1   :  { %3142 = sst [smem:[#allocation24_spill]] %s3127_s0 }
   0x2   :  { %3143 = sst [smem:[#allocation25_spill]] %s3128_s1 }
   0x3   :  { %3144 = sst [smem:[#allocation26_spill]] %s3130_s3 }
   0x4   :  { %8 = vsyncpa [#allocation6], 0 }
   0x5   :  { %10 = vsyncpa [#allocation6 + $0x1], 0 }
   0x6   :  { %11 = vsyncpa [#allocation9], 0 }
   0x7   :  { %13 = vsyncpa [#allocation9 + $0x1], 0 }
   0x8   :  { %14 = vsyncpa [#allocation7], 0 }
   0x9   :  { %16 = vsyncpa [#allocation7 + $0x1], 0  ;;  %s2341_s12 = smov 0   ;;  %s2343_s13 = smov 0  }
   0xa   :  { %s2345_s14 = smov 0   ;;  %s2347_s15 = smov 0  }
   0xb   :  { %s2349_s16 = smov 0   ;;  %s2351_s17 = smov 0  }
   0xc   :  { %s2353_s18 = smov 0   ;;  %s2355_s19 = smov 0  }
   0xd   :  { %s2357_s20 = smov 0   ;;  %s2359_s21 = smov 0  }
   0xe   :  { %s2361_s22 = smov 0  }
   0xf LB: > { %3145 = sst [smem:[#allocation15_spill]] %s2288_s17  ;;  %s31_s23 = sadd.s32 1, %s2300_s20  ;;  %s2308_s22 = sphi %s2361_s22, %s22_s22   ;;  %s2304_s21 = sphi %s2359_s21, %s3185_s21   ;;  %s2300_s20 = sphi %s2357_s20, %s3192_s20   ;;  %s2296_s19 = sphi %s2355_s19, %s3183_s19   ;;  %s2292_s18 = sphi %s2353_s18, %s3191_s18   ;;  %s2288_s17 = sphi %s2351_s17, %s3182_s17   ;;  %s2284_s16 = sphi %s2349_s16, %s3190_s16   ;;  %s2280_s15 = sphi %s2347_s15, %s3189_s15   ;;  %s2276_s14 = sphi %s2345_s14, %s3188_s14   ;;  %s2272_s13 = sphi %s2343_s13, %s3187_s13   ;;  %s2268_s12 = sphi %s2341_s12, %s3186_s12  }
  0x10   : > { %3146 = sst [smem:[#allocation16_spill]] %s2296_s19  ;;  %p49_p0 = scmp.eq.s32.totalorder %s2308_s22, 0 }
  0x11   : > { %3147 = sst [smem:[#allocation17_spill]] %s2304_s21  ;;  %p2398_p1 = scmp.ge.s32.totalorder %s31_s23, 3 }
  0x12   : > { %s67_s25 = sadd.s32 1, %s2276_s14  ;;  %p74_p2 = scmp.ne.s32.totalorder %s2276_s14, %s2272_s13 }
  0x13   : > { %p80_p3 = scmp.ne.s32.totalorder %s2272_s13, %s2268_s12  ;;  %s3194_s23 = smov (%p2398_p1, %s31_s23), 0 }
  0x14   : > { %3149 = sst [smem:[#allocation18_spill]] %s3194_s23  ;;  %p2413_p4 = por %p74_p2, %p49_p0 }
  0x15   : > { %s64_s27 = ssub.s32 %s2300_s20, %s3194_s23  ;;  %p1889_p5 = scmp.lt.s32.totalorder %s2308_s22, 6 }
  0x16   : > { %p65_p6 = scmp.eq.s32.totalorder %s64_s27, 0  ;;  %s178_s28 = sand.u32 1, %s2308_s22  }
  0x17   : > { %s3133_s30 = sand.u32 1, %s2276_s14   ;;  %s1660_s5 = sshll.u32 %s2300_s20, 2 }
  0x18   : > { %s2422_s29 = scalar_select %p65_p6, %s2276_s14, %s67_s25  }
  0x19   : > { %s1659_s4 = sshll.u32 %s3133_s30, 6  ;;  %s3152_s1 = sld [smem:[#allocation25_spill]] }
  0x1a   : > { %3151 = sst [smem:[#allocation19_spill]] %s2422_s29  ;;  %s182_s10 = scalar_lea.vmem [#allocation8], %s1659_s4 }
  0x1b   : > { %s189_s11 = sshll.u32 %s182_s10, 4  ;;  %p2435_p7 = pnand %p1889_p5, %p2413_p4  ;;  %s190_s11 = int_to_ptr.vmem [resolvable:$true] %s189_s11 }
  0x1c   : > { %p1665_p8 = scmp.ge.s32.totalorder %s2308_s22, 1  ;;  %p220_p9 = scmp.lt.s32.totalorder %s2308_s22, 7 }
  0x1d   : > { %s2441_s27 = scalar_lea.sflag [#allocation9], %s178_s28  ;;  %s2310_s4 = smov 192  }
  0x1e   : > { %s3132_s6 = smov 4   ;;  %p2448_p10 = pnand %p1665_p8, %p220_p9 }
  0x1f   : > { %s186_s8 = scalar_lea.hbm %s3152_s1, %s1660_s5  ;;  %s3131_s5 = smov 64  }
  0x20   : > { %s187_s9 = sshll.u32 %s186_s8, 4  ;;  %s2453_s7 = sadd.s32 4294967295, %s2308_s22   ;;  %s188_s9 = int_to_ptr.hbm [resolvable:$true] %s187_s9 }
  0x21   : > { %1881 = dma.hbm_to_vmem [thread:$0]  (!%p2435_p7), %s188_s9, 1024, %s190_s11, %s2441_s27, %s2310_s4, %s3131_s5, %s3132_s6  }
  0x22   : > { %s1653_s28 = sadd.s32 4294967294, %s2308_s22   ;;  %s34_s8 = sadd.s32 1, %s2304_s21 }
  0x23   : > { %s41_s10 = sadd.s32 1, %s2288_s17  ;;  %s3196_s8 = smov (!%p2398_p1, %s34_s8), %s2304_s21 }
  0x24   : > { %p48_p11 = scmp.ne.s32.totalorder %s2288_s17, %s2284_s16  ;;  %p54_p12 = scmp.ne.s32.totalorder %s2284_s16, %s2280_s15 }
  0x25   : > { %p36_p13 = scmp.ge.s32.totalorder %s3196_s8, 2  ;;  %p55_p2 = scmp.eq.s32.totalorder %s2453_s7, 0 }
  0x26   : > { %p2468_p4 = por %p49_p0, %p48_p11  ;;  %p130_p6 = scmp.eq.s32.totalorder %s2453_s7, 5 }
  0x27   : > { %s3198_s8 = smov (%p36_p13, %s3196_s8), 0  ;;  %p2478_p8 = por %p55_p2, %p54_p12 }
  0x28   : > { %3156 = sst [smem:[#allocation20_spill]] %s3198_s8  ;;  %p2485_p1 = por %p80_p3, %p55_p2 }
  0x29   : > { %s38_s4 = ssub.s32 %s2304_s21, %s3198_s8  ;;  %p2491_p0 = por %p130_p6, %p48_p11 }
  0x2a   : > { %p39_p9 = scmp.eq.s32.totalorder %s38_s4, 0  ;;  %p136_p13 = scmp.eq.s32.totalorder %s1653_s28, 5 }
  0x2b   : > { %s3159_s5 = scalar_select %p2491_p0, 1, 0 }
  0x2c   : > { %s156_s6 = sand.u32 1, %s2288_s17   ;;  %s1806_s30 = sshll.u32 %s2304_s21, 6 }
  0x2d   : > { %3160 = sst [smem:[#allocation21_spill]] %s3159_s5  ;;  %p2503_p3 = por %p136_p13, %p54_p12 }
  0x2e   : > { %s2498_s1 = scalar_select %p39_p9, %s2288_s17, %s41_s10  }
  0x2f   : > { %s3162_s12 = scalar_select %p2503_p3, 1, 0 }
  0x30   : > { %3161 = sst [smem:[#allocation22_spill]] %s2498_s1  ;;  %s1656_s23 = sshll.u32 %s156_s6, 6 }
  0x31   : > { %3163 = sst [smem:[#allocation23_spill]] %s3162_s12  ;;  %s160_s5 = scalar_lea.vmem [#allocation5], %s1656_s23 }
  0x32   : > { %s3164_s0 = sld [smem:[#allocation24_spill]]  ;;  %s168_s28 = sshll.u32 %s160_s5, 4  ;;  %s169_s28 = int_to_ptr.vmem [resolvable:$true] %s168_s28 }
  0x33   : > { %p1876_p11 = pnand %p1889_p5, %p2468_p4  ;;  %s3165_s10 = sand.u32 1, %s2276_s14  }
  0x34   : > { %s1661_s4 = sshll.u32 %s3165_s10, 7  ;;  %s1808_s21 = sshll.u32 %s2300_s20, 7 }
  0x35   : > { %s157_s1 = scalar_lea.sflag [#allocation6], %s156_s6  ;;  %s3166_s17 = smov 4  }
  0x36   : > { %s3167_s12 = smov 64   ;;  %s203_s23 = scalar_lea.vmem [#allocation10], %s1661_s4 }
  0x37   : > { %s212_s8 = sshll.u32 %s203_s23, 4  ;;  %s2313_s5 = smov 128   ;;  %s213_s8 = int_to_ptr.vmem [resolvable:$true] %s212_s8 }
  0x38   : > { %s165_s3 = scalar_lea.hbm %s3164_s0, %s1806_s30  ;;  %s2314_s9 = smov 8  }
  0x39   : > { %s166_s19 = sshll.u32 %s165_s3, 4  ;;  %s209_s3 = scalar_lea.hbm %s3129_s2, %s1808_s21  ;;  %s167_s19 = int_to_ptr.hbm [resolvable:$true] %s166_s19 }
  0x3a   : > { %1878 = dma.hbm_to_vmem [thread:$0]  (!%p1876_p11), %s167_s19, 1024, %s169_s28, %s157_s1, %s3167_s12, %s3167_s12, %s3166_s17  }
  0x3b   : > { %s210_s0 = sshll.u32 %s209_s3, 4  ;;  %224 = sbr.rel (%p2448_p10) target bundleno = 1019 (0x3fb), region = 32  ;;  %s211_s0 = int_to_ptr.hbm [resolvable:$true] %s210_s0 }
  0x3c   : > { %1884 = dma.hbm_to_vmem [thread:$0]  (!%p2435_p7), %s211_s0, 2048, %s213_s8, %s2441_s27, %s2313_s5, %s2313_s5, %s2314_s9  }
  0x3d   : > { %s2529_s6 = sand.u32 (!%p2448_p10), 1, %s2284_s16  }
  0x3e   : > { %s1666_s1 = sshll.u32 (!%p2448_p10), %s2529_s6, 6  ;;  %s227_s17 = scalar_lea.sflag (!%p2448_p10), [#allocation6], %s2529_s6 }
  0x3f   : > { %s2533_s19 = scalar_lea.vmem (!%p2448_p10), [#allocation5], %s1666_s1 }
  0x40   : > { %2255 = dma.done.wait (%p2478_p8), %s227_s17, 1024  }
  0x41   : > { %2257 = vsyncadd (%p2478_p8), %s227_s17, 4294966272  ;;  %s236_s0 = sand.u32 1, %s2453_s7   ;;  %s238_s21 = sand.u32 1, %s2272_s13  }
  0x42   : > { %s1667_s25 = sshll.u32 %s238_s21, 6  ;;  %s237_s27 = scalar_lea.sflag [#allocation9], %s236_s0 }
  0x43   : > { %s2541_s26 = scalar_lea.vmem [#allocation8], %s1667_s25 }
  0x44   : > { %2259 = dma.done.wait (%p2485_p1), %s237_s27, 3072  }
  0x45   : > { %2261 = vsyncadd (%p2485_p1), %s237_s27, 4294964224  ;;  %s1668_s12 = sshll.u32 %s238_s21, 7  ;;  %s1669_s28 = sshll.u32 %s2529_s6, 7 }
  0x46   : > { %s2548_s10 = scalar_lea.vmem [#allocation10], %s1668_s12  ;;  %s2550_s24 = scalar_lea.vmem [#allocation11], %s1669_s28 }
  0x47   : > { %p1670_p5 = scmp.ne.s32.totalorder %s2292_s18, 0 }
  0x49   : > { %290 = sbr.rel (%p1670_p5) target bundleno = 143 (0x8f), region = 48 }
  0x4e   : > { %vm291_vm0 = vcmask 7168   ;;  %v2315_v0 = vmov -1e+30   ;;  %v2316_v1 = vmov 0.0  }
  0x4f   : > { %292 = vst.msk [vmem:[#allocation2] sm:$0xff] %vm291_vm0, %v2315_v0 }
  0x50   : > { %293 = vst.msk [vmem:[#allocation2 + $0x8] sm:$0xff] %vm291_vm0, %v2315_v0 }
  0x51   : > { %294 = vst.msk [vmem:[#allocation2 + $0x10] sm:$0xff] %vm291_vm0, %v2315_v0 }
  0x52   : > { %295 = vst.msk [vmem:[#allocation2 + $0x18] sm:$0xff] %vm291_vm0, %v2315_v0 }
  0x53   : > { %296 = vst.msk [vmem:[#allocation2 + $0x20] sm:$0xff] %vm291_vm0, %v2315_v0 }
  0x54   : > { %297 = vst.msk [vmem:[#allocation2 + $0x28] sm:$0xff] %vm291_vm0, %v2315_v0 }
  0x55   : > { %298 = vst.msk [vmem:[#allocation2 + $0x30] sm:$0xff] %vm291_vm0, %v2315_v0 }
  0x56   : > { %299 = vst.msk [vmem:[#allocation2 + $0x38] sm:$0xff] %vm291_vm0, %v2315_v0 }
  0x57   : > { %300 = vst.msk [vmem:[#allocation2 + $0x40] sm:$0xff] %vm291_vm0, %v2315_v0 }
  0x58   : > { %301 = vst.msk [vmem:[#allocation2 + $0x48] sm:$0xff] %vm291_vm0, %v2315_v0 }
  0x59   : > { %302 = vst.msk [vmem:[#allocation2 + $0x50] sm:$0xff] %vm291_vm0, %v2315_v0 }
  0x5a   : > { %303 = vst.msk [vmem:[#allocation2 + $0x58] sm:$0xff] %vm291_vm0, %v2315_v0 }
  0x5b   : > { %304 = vst.msk [vmem:[#allocation2 + $0x60] sm:$0xff] %vm291_vm0, %v2315_v0 }
  0x5c   : > { %305 = vst.msk [vmem:[#allocation2 + $0x68] sm:$0xff] %vm291_vm0, %v2315_v0 }
  0x5d   : > { %306 = vst.msk [vmem:[#allocation2 + $0x70] sm:$0xff] %vm291_vm0, %v2315_v0 }
  0x5e   : > { %307 = vst.msk [vmem:[#allocation2 + $0x78] sm:$0xff] %vm291_vm0, %v2315_v0 }
  0x5f   : > { %308 = vst.msk [vmem:[#allocation3] sm:$0xff] %vm291_vm0, %v2316_v1 }
  0x60   : > { %309 = vst.msk [vmem:[#allocation3 + $0x8] sm:$0xff] %vm291_vm0, %v2316_v1 }
  0x61   : > { %310 = vst.msk [vmem:[#allocation3 + $0x10] sm:$0xff] %vm291_vm0, %v2316_v1 }
  0x62   : > { %311 = vst.msk [vmem:[#allocation3 + $0x18] sm:$0xff] %vm291_vm0, %v2316_v1 }
  0x63   : > { %312 = vst.msk [vmem:[#allocation3 + $0x20] sm:$0xff] %vm291_vm0, %v2316_v1 }
  0x64   : > { %313 = vst.msk [vmem:[#allocation3 + $0x28] sm:$0xff] %vm291_vm0, %v2316_v1 }
  0x65   : > { %314 = vst.msk [vmem:[#allocation3 + $0x30] sm:$0xff] %vm291_vm0, %v2316_v1 }
  0x66   : > { %315 = vst.msk [vmem:[#allocation3 + $0x38] sm:$0xff] %vm291_vm0, %v2316_v1 }
  0x67   : > { %316 = vst.msk [vmem:[#allocation3 + $0x40] sm:$0xff] %vm291_vm0, %v2316_v1 }
  0x68   : > { %317 = vst.msk [vmem:[#allocation3 + $0x48] sm:$0xff] %vm291_vm0, %v2316_v1 }
  0x69   : > { %318 = vst.msk [vmem:[#allocation3 + $0x50] sm:$0xff] %vm291_vm0, %v2316_v1 }
  0x6a   : > { %319 = vst.msk [vmem:[#allocation3 + $0x58] sm:$0xff] %vm291_vm0, %v2316_v1 }
  0x6b   : > { %320 = vst.msk [vmem:[#allocation3 + $0x60] sm:$0xff] %vm291_vm0, %v2316_v1 }
  0x6c   : > { %321 = vst.msk [vmem:[#allocation3 + $0x68] sm:$0xff] %vm291_vm0, %v2316_v1 }
  0x6d   : > { %322 = vst.msk [vmem:[#allocation3 + $0x70] sm:$0xff] %vm291_vm0, %v2316_v1 }
  0x6e   : > { %323 = vst.msk [vmem:[#allocation3 + $0x78] sm:$0xff] %vm291_vm0, %v2316_v1 }
  0x6f   : > { %324 = vst [vmem:[#allocation4 + $0xb0] sm:$0xff] %v2316_v1 }
  0x70   : > { %325 = vst [vmem:[#allocation4] sm:$0xff] %v2316_v1 }
  0x71   : > { %326 = vst [vmem:[#allocation4 + $0xd8] sm:$0xff] %v2316_v1 }
  0x72   : > { %327 = vst [vmem:[#allocation4 + $0x18] sm:$0xff] %v2316_v1 }
  0x73   : > { %328 = vst [vmem:[#allocation4 + $0x50] sm:$0xff] %v2316_v1 }
  0x74   : > { %329 = vst [vmem:[#allocation4 + $0x68] sm:$0xff] %v2316_v1 }
  0x75   : > { %330 = vst [vmem:[#allocation4 + $0x30] sm:$0xff] %v2316_v1 }
  0x76   : > { %331 = vst [vmem:[#allocation4 + $0x48] sm:$0xff] %v2316_v1 }
  0x77   : > { %332 = vst [vmem:[#allocation4 + $0x80] sm:$0xff] %v2316_v1 }
  0x78   : > { %333 = vst [vmem:[#allocation4 + $0x88] sm:$0xff] %v2316_v1 }
  0x79   : > { %334 = vst [vmem:[#allocation4 + $0xe8] sm:$0xff] %v2316_v1 }
  0x7a   : > { %335 = vst [vmem:[#allocation4 + $0xb8] sm:$0xff] %v2316_v1 }
  0x7b   : > { %336 = vst [vmem:[#allocation4 + $0x60] sm:$0xff] %v2316_v1 }
  0x7c   : > { %337 = vst [vmem:[#allocation4 + $0xf0] sm:$0xff] %v2316_v1 }
  0x7d   : > { %338 = vst [vmem:[#allocation4 + $0x8] sm:$0xff] %v2316_v1 }
  0x7e   : > { %339 = vst [vmem:[#allocation4 + $0x78] sm:$0xff] %v2316_v1 }
  0x7f   : > { %340 = vst [vmem:[#allocation4 + $0x38] sm:$0xff] %v2316_v1 }
  0x80   : > { %341 = vst [vmem:[#allocation4 + $0x58] sm:$0xff] %v2316_v1 }
  0x81   : > { %342 = vst [vmem:[#allocation4 + $0x40] sm:$0xff] %v2316_v1 }
  0x82   : > { %343 = vst [vmem:[#allocation4 + $0xc8] sm:$0xff] %v2316_v1 }
  0x83   : > { %344 = vst [vmem:[#allocation4 + $0xe0] sm:$0xff] %v2316_v1 }
  0x84   : > { %345 = vst [vmem:[#allocation4 + $0x90] sm:$0xff] %v2316_v1 }
  0x85   : > { %346 = vst [vmem:[#allocation4 + $0x70] sm:$0xff] %v2316_v1 }
  0x86   : > { %347 = vst [vmem:[#allocation4 + $0xc0] sm:$0xff] %v2316_v1 }
  0x87   : > { %348 = vst [vmem:[#allocation4 + $0xa8] sm:$0xff] %v2316_v1 }
  0x88   : > { %349 = vst [vmem:[#allocation4 + $0xd0] sm:$0xff] %v2316_v1 }
  0x89   : > { %350 = vst [vmem:[#allocation4 + $0x10] sm:$0xff] %v2316_v1 }
  0x8a   : > { %351 = vst [vmem:[#allocation4 + $0x28] sm:$0xff] %v2316_v1 }
  0x8b   : > { %352 = vst [vmem:[#allocation4 + $0xa0] sm:$0xff] %v2316_v1 }
  0x8c   : > { %353 = vst [vmem:[#allocation4 + $0xf8] sm:$0xff] %v2316_v1 }
  0x8d   : > { %354 = vst [vmem:[#allocation4 + $0x20] sm:$0xff] %v2316_v1 }
  0x8e   : > { %355 = vst [vmem:[#allocation4 + $0x98] sm:$0xff] %v2316_v1 }
  0x8f PF: > { %v1824_v2 = vld [vmem:[%s2541_s26 + $0x38] sm:$0xff]  ;;  %v1823_v3 = vld [vmem:[%s2541_s26 + $0x30] sm:$0xff]  ;;  %v1822_v4 = vld [vmem:[%s2541_s26 + $0x28] sm:$0xff]  ;;  %v2317_v31 = vmov 0   ;;  %vm853_vm1 = vcmask 7168   ;;  %p1799_p7 = scmp.ne.s32.totalorder %s2292_s18, 2 }
  0x90   : > { %484 = vmatpush.bf16.msra.mxu0 %v1824_v2  ;;  %1843 = vmatpush.bf16.msra.mxu3 %v1824_v2  ;;  %v1821_v5 = vld [vmem:[%s2541_s26 + $0x20] sm:$0xff]  ;;  %v1820_v6 = vld [vmem:[%s2541_s26 + $0x18] sm:$0xff]  ;;  %v1819_v7 = vld [vmem:[%s2541_s26 + $0x10] sm:$0xff] }
  0x91   : > { %v1818_v8 = vld [vmem:[%s2541_s26 + $0x8] sm:$0xff]  ;;  %v1817_v9 = vld [vmem:[%s2541_s26] sm:$0xff]  ;;  %v1815_v11 = vld [vmem:[%s2533_s19 + $0x30] sm:$0xff]  ;;  %1990 = vset.pattern.permute.xlu2 %v2317_v31  ;;  %1991 = vset.pattern.permute.xlu0 %v2317_v31 }
  0x92   : > { %v1809_v10 = vld [vmem:[%s2533_s19] sm:$0xff]  ;;  %v1810_v12 = vld [vmem:[%s2533_s19 + $0x8] sm:$0xff]  ;;  %v1811_v13 = vld [vmem:[%s2533_s19 + $0x10] sm:$0xff]  ;;  %1992 = vset.pattern.permute.xlu1 %v2317_v31 }
  0x93   : > { %v1812_v14 = vld [vmem:[%s2533_s19 + $0x18] sm:$0xff]  ;;  %v1813_v16 = vld [vmem:[%s2533_s19 + $0x20] sm:$0xff]  ;;  %v1814_v17 = vld [vmem:[%s2533_s19 + $0x28] sm:$0xff] }
  0x94   : > { %485 = vmatpush.bf16.msra.mxu0 %v1823_v3  ;;  %1844 = vmatpush.bf16.msra.mxu3 %v1823_v3  ;;  %v1816_v15 = vld [vmem:[%s2533_s19 + $0x38] sm:$0xff]  ;;  %v2649_v35 = vld [vmem:[#allocation2] sm:$0xff]  ;;  %v2661_v40 = vld [vmem:[#allocation2 + $0x8] sm:$0xff] }
  0x95   : > { %v2659_v39 = vld [vmem:[#allocation2 + $0x60] sm:$0xff]  ;;  %v2678_v47 = vld [vmem:[#allocation2 + $0x10] sm:$0xff]  ;;  %v2680_v48 = vld [vmem:[#allocation2 + $0x68] sm:$0xff] }
  0x96   : > { %v2698_v55 = vld [vmem:[#allocation2 + $0x18] sm:$0xff]  ;;  %v2708_v59 = vld [vmem:[#allocation2 + $0x20] sm:$0xff]  ;;  %v2716_v62 = vld [vmem:[#allocation2 + $0x28] sm:$0xff] }
  0x97   : > { %v2726_v2 = vld [vmem:[#allocation2 + $0x30] sm:$0xff]  ;;  %v1771_v54 = vld [vmem:[%s2548_s10 + $0x48] sm:$0xf0]  ;;  %v1829_v45 = vld [vmem:[%s2548_s10 + $0x24] sm:$0xf] }
  0x98   : > { %486 = vmatpush.bf16.msra.mxu0 %v1822_v4  ;;  %1845 = vmatpush.bf16.msra.mxu3 %v1822_v4  ;;  %v1739_v1 = vld [vmem:[%s2548_s10 + $0x8] sm:$0xf0] }
  0x9c   : > { %487 = vmatpush.bf16.msra.mxu0 %v1821_v5  ;;  %1846 = vmatpush.bf16.msra.mxu3 %v1821_v5  ;;  %v1827_v5 = vld [vmem:[%s2548_s10 + $0x14] sm:$0xf] }
  0xa0   : > { %488 = vmatpush.bf16.msra.mxu0 %v1820_v6  ;;  %1847 = vmatpush.bf16.msra.mxu3 %v1820_v6  ;;  %v2737_v6 = vld [vmem:[#allocation2 + $0x38] sm:$0xff] }
  0xa4   : > { %489 = vmatpush.bf16.msra.mxu0 %v1819_v7  ;;  %1848 = vmatpush.bf16.msra.mxu3 %v1819_v7 }
  0xa8   : > { %490 = vmatpush.bf16.msra.mxu0 %v1818_v8  ;;  %1849 = vmatpush.bf16.msra.mxu3 %v1818_v8 }
  0xac   : > { %491 = vmatpush.bf16.msra.mxu0 %v1817_v9  ;;  %1850 = vmatpush.bf16.msra.mxu3 %v1817_v9  ;;  %v2745_v9 = vld [vmem:[#allocation2 + $0x40] sm:$0xff] }
  0xaf   : > { %492 = vmatmul.bf16.vlgmr.msra.gmra.mxu0 %v1809_v10  ;;  %522 = vmatmul.bf16.vlgmr.msra.gmra.mxu3 %v1815_v11 }
  0xbf   : > { %497 = vmatmul.bf16.gmra.mxu0 %v1810_v12  ;;  %527 = vmatmul.bf16.gmra.mxu3 %v1816_v15  ;;  %v2753_v12 = vld [vmem:[#allocation2 + $0x48] sm:$0xff]  ;;  %v1793_v15 = vld [vmem:[%s2548_s10 + $0x70] sm:$0xf] }
  0xcf   : > { %502 = vmatmul.bf16.gmra.mxu0 %v1811_v13 }
  0xdf   : > { %507 = vmatmul.bf16.gmra.mxu0 %v1812_v14 }
  0xef   : > { %512 = vmatmul.bf16.gmra.mxu0 %v1813_v16  ;;  %v1840_v16 = vld [vmem:[%s2548_s10 + $0x74] sm:$0xf0] }
  0xff   : > { %517 = vmatmul.bf16.gmra.mxu0 %v1814_v17  ;;  %v1839_v17 = vld [vmem:[%s2548_s10 + $0x74] sm:$0xf] }
 0x12c   : > { %v2601_v18 = vpop.f32.mrf.mxu0 }
 0x12d   : > { %549 = vmax.xlane.f32.xlu0 %v2601_v18 }
 0x132   : > { %v2604_v19 = vpop.f32.mrf.mxu3 }
 0x133   : > { %573 = vmax.xlane.f32.xlu2 %v2604_v19 }
 0x134   : > { %v2607_v20 = vpop.f32.mrf.mxu0 }
 0x135   : > { %551 = vmax.xlane.f32.xlu0 %v2607_v20 }
 0x13a   : > { %v2610_v21 = vpop.f32.mrf.mxu3 }
 0x13c   : > { %v2612_v22 = vpop.f32.mrf.mxu0 }
 0x13d   : > { %553 = vmax.xlane.f32.xlu1 %v2612_v22  ;;  %575 = vmax.xlane.f32.xlu0 %v2610_v21 }
 0x142   : > { %v2643_v33 = vpop.f32.mrf.mxu3 }
 0x144   : > { %v2616_v23 = vpop.f32.mrf.mxu0 }
 0x145   : > { %555 = vmax.xlane.f32.xlu1 %v2616_v23 }
 0x14a   : > { %v2646_v34 = vpop.f32.mrf.mxu3 }
 0x14c   : > { %v2619_v24 = vpop.f32.mrf.mxu0 }
 0x14d   : > { %557 = vmax.xlane.f32.xlu2 %v2619_v24 }
 0x154   : > { %v2622_v25 = vpop.f32.mrf.mxu0 }
 0x155   : > { %559 = vmax.xlane.f32.xlu2 %v2622_v25 }
 0x15c   : > { %v2625_v26 = vpop.f32.mrf.mxu0 }
 0x15d   : > { %561 = vmax.xlane.f32.xlu0 %v2625_v26 }
 0x164   : > { %v2628_v27 = vpop.f32.mrf.mxu0 }
 0x165   : > { %563 = vmax.xlane.f32.xlu1 %v2628_v27 }
 0x16c   : > { %v2631_v28 = vpop.f32.mrf.mxu0 }
 0x16d   : > { %565 = vmax.xlane.f32.xlu2 %v2631_v28 }
 0x174   : > { %v2634_v29 = vpop.f32.mrf.mxu0 }
 0x175   : > { %567 = vmax.xlane.f32.xlu0 %v2634_v29 }
 0x17c   : > { %v2637_v30 = vpop.f32.mrf.mxu0 }
 0x17d   : > { %569 = vmax.xlane.f32.xlu1 %v2637_v30 }
 0x184   : > { %v2640_v32 = vpop.f32.mrf.mxu0 }
 0x185   : > { %571 = vmax.xlane.f32.xlu1 %v2640_v32 }
 0x18d   : > { %577 = vmax.xlane.f32.xlu1 %v2643_v33 }
 0x195   : > { %579 = vmax.xlane.f32.xlu1 %v2646_v34 }
 0x1a0   : > { %v550_v36 = vpop.xlane.xlu0 %549 }
 0x1a1   : > { %v2652_v37 = vmax.f32 %v2649_v35, %v550_v36  ;;  %v1794_v36 = vor.u32 %v1840_v16, %v1793_v15  ;;  %v1777_v15 = vld [vmem:[%s2548_s10 + $0x50] sm:$0xf]  ;;  %v1836_v16 = vld [vmem:[%s2548_s10 + $0x54] sm:$0xf0] }
 0x1a3   : > { %1280 = vst.msk [vmem:[#allocation2] sm:$0xff] %vm853_vm1, %v2652_v37  ;;  %647 = vperm.xlu2 %1990, %v2652_v37   ;;  %1118 = vmatpush.bf16.msra.mxu1 %v1794_v36 }
 0x1a4   : > { %1851 = vmatpush.bf16.msrb.mxu3 %v1794_v36  ;;  %v1778_v36 = vor.u32 %v1836_v16, %v1777_v15 }
 0x1a6   : > { %v574_v41 = vpop.xlane.xlu2 %573 }
 0x1a7   : > { %v2664_v42 = vmax.f32 %v2659_v39, %v574_v41  ;;  %v1795_v41 = vld [vmem:[%s2548_s10 + $0x78] sm:$0xf0] }
 0x1a8   : > { %v552_v43 = vpop.xlane.xlu0 %551 }
 0x1a9   : > { %v2667_v44 = vmax.f32 %v2661_v40, %v552_v43  ;;  %1292 = vst.msk [vmem:[#allocation2 + $0x60] sm:$0xff] %vm853_vm1, %v2664_v42  ;;  %v2766_v43 = vor.u32 %v1839_v17, %v1795_v41  ;;  %v1835_v17 = vld [vmem:[%s2548_s10 + $0x54] sm:$0xf]  ;;  %v1779_v41 = vld [vmem:[%s2548_s10 + $0x58] sm:$0xf0] }
 0x1ab   : > { %v598_v46 = vsub.f32 %v2661_v40, %v2667_v44  ;;  %1281 = vst.msk [vmem:[#allocation2 + $0x8] sm:$0xff] %vm853_vm1, %v2667_v44  ;;  %652 = vperm.xlu0 %1991, %v2667_v44   ;;  %1167 = vmatpush.bf16.msra.mxu2 %v2766_v43 }
 0x1b0   : > { %v554_v49 = vpop.xlane.xlu1 %553  ;;  %v576_v50 = vpop.xlane.xlu0 %575 }
 0x1b1   : > { %v2683_v51 = vmax.f32 %v2678_v47, %v554_v49  ;;  %v2686_v52 = vmax.f32 %v2680_v48, %v576_v50  ;;  %v2768_v49 = vld [vmem:[#allocation2 + $0x50] sm:$0xff]  ;;  %v1785_v50 = vld [vmem:[%s2548_s10 + $0x60] sm:$0xf] }
 0x1b3   : > { %v599_v53 = vsub.f32 %v2678_v47, %v2683_v51  ;;  %1282 = vst.msk [vmem:[#allocation2 + $0x10] sm:$0xff] %vm853_vm1, %v2683_v51  ;;  %707 = vperm.xlu0 %1991, %v2664_v42   ;;  %657 = vperm.xlu1 %1992, %v2683_v51   ;;  %v1763_v51 = vld [vmem:[%s2548_s10 + $0x38] sm:$0xf0] }
 0x1b4   : > { %1293 = vst.msk [vmem:[#allocation2 + $0x68] sm:$0xff] %vm853_vm1, %v2686_v52 }
 0x1b5   : > { %v617_v15 = vmul.f32 1.442695, %v599_v53 }
 0x1b7   : > { %1993 = vpow2.f32 %v617_v15 }
 0x1b8   : > { %v556_v56 = vpop.xlane.xlu1 %555 }
 0x1b9   : > { %v2701_v57 = vmax.f32 %v2698_v55, %v556_v56  ;;  %v1838_v56 = vld [vmem:[%s2548_s10 + $0x64] sm:$0xf0] }
 0x1bb   : > { %1283 = vst.msk [vmem:[#allocation2 + $0x18] sm:$0xff] %vm853_vm1, %v2701_v57  ;;  %662 = vperm.xlu2 %1990, %v2701_v57  }
 0x1c0   : > { %v558_v60 = vpop.xlane.xlu2 %557 }
 0x1c1   : > { %v2711_v61 = vmax.f32 %v2708_v59, %v558_v60  ;;  %v1837_v60 = vld [vmem:[%s2548_s10 + $0x64] sm:$0xf] }
 0x1c3   : > { %1284 = vst.msk [vmem:[#allocation2 + $0x20] sm:$0xff] %vm853_vm1, %v2711_v61  ;;  %667 = vperm.xlu2 %1990, %v2711_v61   ;;  %v601_v53 = vsub.f32 %v2708_v59, %v2711_v61 }
 0x1c5   : > { %v621_v15 = vmul.f32 1.442695, %v601_v53  ;;  %v1737_v53 = vld [vmem:[%s2548_s10] sm:$0xf] }
 0x1c7   : > { %1995 = vpow2.f32 %v621_v15 }
 0x1c8   : > { %v560_v63 = vpop.xlane.xlu2 %559 }
 0x1c9   : > { %v2719_v0 = vmax.f32 %v2716_v62, %v560_v63  ;;  %v1786_v63 = vor.u32 %v1838_v56, %v1785_v50  ;;  %v2787_v50 = vor.u32 %v1835_v17, %v1779_v41  ;;  %v2789_v56 = vld [vmem:[#allocation2 + $0x58] sm:$0xff] }
 0x1cb   : > { %1285 = vst.msk [vmem:[#allocation2 + $0x28] sm:$0xff] %vm853_vm1, %v2719_v0  ;;  %672 = vperm.xlu2 %1990, %v2719_v0   ;;  %1119 = vmatpush.bf16.msra.mxu1 %v1786_v63 }
 0x1cc   : > { %1852 = vmatpush.bf16.msrb.mxu3 %v1786_v63  ;;  %v1834_v63 = vld [vmem:[%s2548_s10 + $0x44] sm:$0xf0] }
 0x1cf   : > { %1120 = vmatpush.bf16.msra.mxu1 %v1778_v36 }
 0x1d0   : > { %v562_v3 = vpop.xlane.xlu0 %561  ;;  %1853 = vmatpush.bf16.msrb.mxu3 %v1778_v36  ;;  %v1761_v36 = vld [vmem:[%s2548_s10 + $0x30] sm:$0xf] }
 0x1d1   : > { %v2729_v4 = vmax.f32 %v2726_v2, %v562_v3  ;;  %v1787_v3 = vld [vmem:[%s2548_s10 + $0x68] sm:$0xf0] }
 0x1d3   : > { %1286 = vst.msk [vmem:[#allocation2 + $0x30] sm:$0xff] %vm853_vm1, %v2729_v4  ;;  %712 = vperm.xlu2 %1990, %v2686_v52   ;;  %677 = vperm.xlu1 %1992, %v2729_v4  }
 0x1d8   : > { %v564_v7 = vpop.xlane.xlu1 %563 }
 0x1d9   : > { %v2740_v8 = vmax.f32 %v2737_v6, %v564_v7 }
 0x1db   : > { %1287 = vst.msk [vmem:[#allocation2 + $0x38] sm:$0xff] %vm853_vm1, %v2740_v8  ;;  %682 = vperm.xlu0 %1991, %v2740_v8  }
 0x1e0   : > { %v566_v10 = vpop.xlane.xlu2 %565 }
 0x1e1   : > { %v2748_v11 = vmax.f32 %v2745_v9, %v566_v10  ;;  %v2775_v10 = vor.u32 %v1837_v60, %v1787_v3  ;;  %v1769_v60 = vld [vmem:[%s2548_s10 + $0x40] sm:$0xf]  ;;  %v1833_v3 = vld [vmem:[%s2548_s10 + $0x44] sm:$0xf] }
 0x1e2   : > { %v2799_v17 = vor.u32 %v1833_v3, %v1771_v54  ;;  %v2816_v3 = vld [vmem:[#allocation2 + $0x70] sm:$0xff] }
 0x1e3   : > { %1288 = vst.msk [vmem:[#allocation2 + $0x40] sm:$0xff] %vm853_vm1, %v2748_v11  ;;  %687 = vperm.xlu0 %1991, %v2748_v11   ;;  %1168 = vmatpush.bf16.msra.mxu2 %v2775_v10 }
 0x1e7   : > { %1169 = vmatpush.bf16.msra.mxu2 %v2787_v50 }
 0x1e8   : > { %v568_v13 = vpop.xlane.xlu0 %567 }
 0x1e9   : > { %v2756_v14 = vmax.f32 %v2753_v12, %v568_v13 }
 0x1eb   : > { %1289 = vst.msk [vmem:[#allocation2 + $0x48] sm:$0xff] %vm853_vm1, %v2756_v14  ;;  %1170 = vmatpush.bf16.msra.mxu2 %v2799_v17 }
 0x1f0   : > { %v570_v7 = vpop.xlane.xlu1 %569 }
 0x1f1   : > { %v2778_v13 = vmax.f32 %v2768_v49, %v570_v7  ;;  %v1770_v7 = vor.u32 %v1834_v63, %v1769_v60  ;;  %v1832_v60 = vld [vmem:[%s2548_s10 + $0x34] sm:$0xf0]  ;;  %v1831_v63 = vld [vmem:[%s2548_s10 + $0x34] sm:$0xf] }
 0x1f2   : > { %v1762_v47 = vor.u32 %v1832_v60, %v1761_v36  ;;  %v2814_v54 = vor.u32 %v1831_v63, %v1763_v51  ;;  %v1755_v60 = vld [vmem:[%s2548_s10 + $0x28] sm:$0xf0]  ;;  %v2828_v63 = vpop.eup %1993  ;;  %v1828_v51 = vld [vmem:[%s2548_s10 + $0x14] sm:$0xf0] }
 0x1f3   : > { %1290 = vst.msk [vmem:[#allocation2 + $0x50] sm:$0xff] %vm853_vm1, %v2778_v13  ;;  %1121 = vmatpush.bf16.msra.mxu1 %v1770_v7  ;;  %1854 = vmatpush.bf16.msrb.mxu3 %v1770_v7  ;;  %v1753_v7 = vld [vmem:[%s2548_s10 + $0x20] sm:$0xf]  ;;  %v2823_v59 = vor.u32 %v1829_v45, %v1755_v60  ;;  %v2848_v60 = vld [vmem:[#allocation2 + $0x78] sm:$0xff]  ;;  %v607_v44 = vsub.f32 %v2768_v49, %v2778_v13 }
 0x1f4   : > { %1171 = vmatpush.bf16.msra.mxu2 %v2814_v54 }
 0x1f7   : > { %1122 = vmatpush.bf16.msra.mxu1 %v1762_v47  ;;  %1855 = vmatpush.bf16.msrb.mxu3 %v1762_v47  ;;  %v1745_v47 = vld [vmem:[%s2548_s10 + $0x10] sm:$0xf] }
 0x1f8   : > { %v572_v16 = vpop.xlane.xlu1 %571  ;;  %1172 = vmatpush.bf16.msra.mxu2 %v2823_v59  ;;  %v1746_v45 = vor.u32 %v1828_v51, %v1745_v47  ;;  %v1826_v47 = vld [vmem:[%s2548_s10 + $0x4] sm:$0xf0]  ;;  %v1825_v51 = vld [vmem:[%s2548_s10 + $0x4] sm:$0xf] }
 0x1f9   : > { %v2802_v41 = vmax.f32 %v2789_v56, %v572_v16  ;;  %v1830_v16 = vld [vmem:[%s2548_s10 + $0x24] sm:$0xf0]  ;;  %v1738_v38 = vor.u32 %v1826_v47, %v1737_v53  ;;  %v633_v53 = vmul.f32 1.442695, %v607_v44 }
 0x1fa   : > { %v1754_v36 = vor.u32 %v1830_v16, %v1753_v7  ;;  %v604_v7 = vsub.f32 %v2737_v6, %v2740_v8  ;;  %v2858_v6 = vor.u32 %v1825_v51, %v1739_v1  ;;  %v2860_v8 = vpop.eup %1995 }
 0x1fb   : > { %1291 = vst.msk [vmem:[#allocation2 + $0x58] sm:$0xff] %vm853_vm1, %v2802_v41  ;;  %702 = vperm.xlu0 %1991, %v2802_v41  }
 0x1fc   : > { %1123 = vmatpush.bf16.msra.mxu1 %v1754_v36  ;;  %1856 = vmatpush.bf16.msrb.mxu3 %v1754_v36  ;;  %v615_v36 = vmul.f32 1.442695, %v598_v46  ;;  %v627_v58 = vmul.f32 1.442695, %v604_v7  ;;  %v3168_v46 = vsub.f32 %v2716_v62, %v2719_v0  ;;  %v605_v62 = vsub.f32 %v2745_v9, %v2748_v11 }
 0x1fe   : > { %1997 = vpow2.f32 %v615_v36  ;;  %v623_v1 = vmul.f32 1.442695, %v3168_v46  ;;  %v3172_v46 = vsub.f32 %v2753_v12, %v2756_v14 }
 0x1ff   : > { %1999 = vpow2.f32 %v627_v58  ;;  %v3169_v58 = vsub.f32 %v2649_v35, %v2652_v37  ;;  %v629_v35 = vmul.f32 1.442695, %v605_v62 }
 0x200   : > { %v578_v31 = vpop.xlane.xlu1 %577  ;;  %1124 = vmatpush.bf16.msra.mxu1 %v1746_v45  ;;  %1857 = vmatpush.bf16.msrb.mxu3 %v1746_v45  ;;  %2001 = vpow2.f32 %v623_v1  ;;  %v631_v1 = vmul.f32 1.442695, %v3172_v46 }
 0x201   : > { %v2826_v61 = vmax.f32 %v2816_v3, %v578_v31  ;;  %v1747_v31 = vld [vmem:[%s2548_s10 + $0x18] sm:$0xf0]  ;;  %2003 = vpow2.f32 %v633_v53 }
 0x202   : > { %v2843_v16 = vor.u32 %v1827_v5, %v1747_v31  ;;  %v613_v31 = vmul.f32 1.442695, %v3169_v58 }
 0x203   : > { %1294 = vst.msk [vmem:[#allocation2 + $0x70] sm:$0xff] %vm853_vm1, %v2826_v61  ;;  %914 = vperm.xlu0 %1991, %v2828_v63   ;;  %717 = vperm.xlu2 %1990, %v2826_v61  }
 0x204   : > { %1173 = vmatpush.bf16.msra.mxu2 %v2843_v16  ;;  %1125 = vmatpush.bf16.msra.mxu1 %v1738_v38  ;;  %v2876_v45 = vpop.eup %1997  ;;  %2005 = vpow2.f32 %v613_v31 }
 0x205   : > { %1858 = vmatpush.bf16.msrb.mxu3 %v1738_v38  ;;  %v648_v38 = vpop.permute.xlu2 %647  ;;  %v2882_v49 = vpop.eup %1999  ;;  %2007 = vpow2.f32 %v629_v35 }
 0x206   : > { %v2890_v37 = vpop.eup %2001  ;;  %v725_v9 = vsub.f32 %v2601_v18, %v648_v38 }
 0x207   : > { %v2896_v7 = vpop.eup %2003 }
 0x208   : > { %v580_v15 = vpop.xlane.xlu1 %579  ;;  %1174 = vmatpush.bf16.msra.mxu2 %v2858_v6 }
 0x209   : > { %v2856_v5 = vmax.f32 %v2848_v60, %v580_v15  ;;  %1859 = vmatpush.bf16.msra.mxu3 %v2766_v43  ;;  %v3170_v43 = vsub.f32 %v2698_v55, %v2701_v57 }
 0x20a   : > { %v2899_v11 = vpop.eup %2005 }
 0x20b   : > { %v612_v40 = vsub.f32 %v2848_v60, %v2856_v5  ;;  %1295 = vst.msk [vmem:[#allocation2 + $0x78] sm:$0xff] %vm853_vm1, %v2856_v5  ;;  %924 = vperm.xlu0 %1991, %v2860_v8   ;;  %692 = vperm.xlu2 %1990, %v2756_v14   ;;  %v2911_v47 = vpop.eup %2007 }
 0x20c   : > { %722 = vperm.xlu1 %1992, %v2856_v5  }
 0x20d   : > { %1860 = vmatpush.bf16.msra.mxu3 %v2775_v10  ;;  %v619_v10 = vmul.f32 1.442695, %v3170_v43 }
 0x20f   : > { %2009 = vpow2.f32 %v619_v10 }
 0x211   : > { %1861 = vmatpush.bf16.msra.mxu3 %v2787_v50  ;;  %v741_v50 = vmul.f32 1.442695, %v725_v9 }
 0x213   : > { %939 = vperm.xlu0 %1991, %v2882_v49   ;;  %909 = vperm.xlu2 %1990, %v2876_v45   ;;  %2011 = vpow2.f32 %v741_v50 }
 0x214   : > { %697 = vperm.xlu1 %1992, %v2778_v13   ;;  %v608_v13 = vsub.f32 %v2789_v56, %v2802_v41  ;;  %v3171_v56 = vsub.f32 %v2726_v2, %v2729_v4 }
 0x215   : > { %v663_v0 = vpop.permute.xlu2 %662  ;;  %1862 = vmatpush.bf16.msra.mxu3 %v2799_v17  ;;  %v2916_v51 = vpop.eup %2009 }
 0x216   : > { %v635_v17 = vmul.f32 1.442695, %v608_v13  ;;  %v625_v41 = vmul.f32 1.442695, %v3171_v56 }
 0x219   : > { %1863 = vmatpush.bf16.msra.mxu3 %v2814_v54  ;;  %v2012_v15 = vpop.eup %2011 }
 0x21b   : > { %954 = vperm.xlu0 %1991, %v2896_v7   ;;  %929 = vperm.xlu2 %1990, %v2890_v37  }
 0x21c   : > { %904 = vperm.xlu1 %1992, %v2899_v11  }
 0x21d   : > { %v2906_v55 = vpop.permute.xlu2 %667  ;;  %v653_v57 = vpop.permute.xlu0 %652  ;;  %1864 = vmatpush.bf16.msra.mxu3 %v2823_v59 }
 0x21e   : > { %v726_v18 = vsub.f32 %v2607_v20, %v653_v57 }
 0x220   : > { %v743_v36 = vmul.f32 1.442695, %v726_v18 }
 0x221   : > { %1865 = vmatpush.bf16.msra.mxu3 %v2843_v16  ;;  %v728_v16 = vsub.f32 %v2616_v23, %v663_v0  ;;  %v3173_v23 = vsub.f32 %v2659_v39, %v2664_v42  ;;  %v729_v39 = vsub.f32 %v2619_v24, %v2906_v55 }
 0x222   : > { %2013 = vpow2.f32 %v743_v36 }
 0x223   : > { %944 = vperm.xlu2 %1990, %v2911_v47   ;;  %2015 = vpow2.f32 %v635_v17  ;;  %v747_v12 = vmul.f32 1.442695, %v728_v16  ;;  %v637_v62 = vmul.f32 1.442695, %v3173_v23  ;;  %v749_v18 = vmul.f32 1.442695, %v729_v39 }
 0x224   : > { %919 = vperm.xlu1 %1992, %v2916_v51   ;;  %2017 = vpow2.f32 %v625_v41 }
 0x225   : > { %v673_v20 = vpop.permute.xlu2 %672  ;;  %v708_v54 = vpop.permute.xlu0 %707  ;;  %1866 = vmatpush.bf16.msra.mxu3 %v2858_v6  ;;  %2019 = vpow2.f32 %v631_v1 }
 0x226   : > { %v658_v59 = vpop.permute.xlu1 %657  ;;  %v737_v44 = vsub.f32 %v2604_v19, %v708_v54 }
 0x227   : > { %v727_v4 = vsub.f32 %v2612_v22, %v658_v59 }
 0x228   : > { %v2922_v2 = vpop.eup %2013  ;;  %v765_v19 = vmul.f32 1.442695, %v737_v44 }
 0x229   : > { %v2926_v38 = vpop.eup %2015  ;;  %v1014_v53 = vpack.c.bf16 %v2922_v2, %v2012_v15  ;;  %v745_v22 = vmul.f32 1.442695, %v727_v4 }
 0x22a   : > { %v2934_v58 = vpop.eup %2017  ;;  %2021 = vpow2.f32 %v765_v19 }
 0x22b   : > { %959 = vperm.xlu2 %1990, %v2926_v38   ;;  %1126 = vmatmul.bf16.vlgmr.msra.gmra.mxu1 %v1014_v53  ;;  %2023 = vpow2.f32 %v745_v22  ;;  %v2941_v0 = vpop.eup %2019 }
 0x22c   : > { %1175 = vmatmul.bf16.vlgmr.msra.gmra.mxu2 %v1014_v53  ;;  %934 = vperm.xlu1 %1992, %v2934_v58  }
 0x22d   : > { %v713_v6 = vpop.permute.xlu2 %712 }
 0x22e   : > { %v738_v31 = vsub.f32 %v2610_v21, %v713_v6  ;;  %v730_v21 = vsub.f32 %v2622_v25, %v673_v20 }
 0x230   : > { %v767_v14 = vmul.f32 1.442695, %v738_v31  ;;  %v2022_v35 = vpop.eup %2021  ;;  %v751_v50 = vmul.f32 1.442695, %v730_v21 }
 0x231   : > { %v2024_v43 = vpop.eup %2023 }
 0x232   : > { %2025 = vpow2.f32 %v767_v14 }
 0x233   : > { %2027 = vpow2.f32 %v747_v12 }
 0x234   : > { %949 = vperm.xlu1 %1992, %v2941_v0   ;;  %2029 = vpow2.f32 %v637_v62 }
 0x235   : > { %2031 = vpow2.f32 %v751_v50 }
 0x236   : > { %2033 = vpow2.f32 %v749_v18 }
 0x238   : > { %v2026_v10 = vpop.eup %2025 }
 0x239   : > { %v2028_v9 = vpop.eup %2027  ;;  %v2945_v13 = vpack.c.bf16 %v2026_v10, %v2022_v35 }
 0x23a   : > { %v1015_v57 = vpack.c.bf16 %v2028_v9, %v2024_v43  ;;  %v2950_v42 = vpop.eup %2029 }
 0x23b   : > { %1156 = vmatmul.bf16.vlgmr.msrb.gmra.mxu3 %v2945_v13  ;;  %v2032_v17 = vpop.eup %2031 }
 0x23c   : > { %1131 = vmatmul.bf16.gmra.mxu1 %v1015_v57  ;;  %1180 = vmatmul.bf16.gmra.mxu2 %v1015_v57  ;;  %v2034_v36 = vpop.eup %2033 }
 0x23d   : > { %964 = vperm.xlu1 %1992, %v2950_v42   ;;  %v1016_v41 = vpack.c.bf16 %v2032_v17, %v2034_v36 }
 0x245   : > { %829 = vadd.xlane.f32.xlu0 %v2022_v35  ;;  %v678_v25 = vpop.permute.xlu1 %677 }
 0x246   : > { %v731_v56 = vsub.f32 %v2625_v26, %v678_v25 }
 0x248   : > { %v753_v24 = vmul.f32 1.442695, %v731_v56  ;;  %v643_v56 = vmul.f32 1.442695, %v612_v40  ;;  %v871_v40 = vld [vmem:[#allocation4] sm:$0xff] }
 0x24a   : > { %2035 = vpow2.f32 %v753_v24  ;;  %v870_v24 = vld [vmem:[#allocation4 + $0xb0] sm:$0xff] }
 0x24c   : > { %1136 = vmatmul.bf16.gmra.mxu1 %v1016_v41  ;;  %1185 = vmatmul.bf16.gmra.mxu2 %v1016_v41 }
 0x24d   : > { %v683_v55 = vpop.permute.xlu0 %682  ;;  %809 = vadd.xlane.f32.xlu0 %v2024_v43 }
 0x24e   : > { %v732_v20 = vsub.f32 %v2628_v27, %v683_v55 }
 0x250   : > { %v755_v54 = vmul.f32 1.442695, %v732_v20  ;;  %v2036_v59 = vpop.eup %2035 }
 0x252   : > { %2037 = vpow2.f32 %v755_v54 }
 0x254   : > { %805 = vadd.xlane.f32.xlu2 %v2012_v15 }
 0x255   : > { %v688_v1 = vpop.permute.xlu0 %687 }
 0x256   : > { %v733_v16 = vsub.f32 %v2631_v28, %v688_v1 }
 0x258   : > { %v2038_v44 = vpop.eup %2037  ;;  %v757_v19 = vmul.f32 1.442695, %v733_v16 }
 0x259   : > { %v1017_v4 = vpack.c.bf16 %v2038_v44, %v2036_v59 }
 0x25c   : > { %1141 = vmatmul.bf16.gmra.mxu1 %v1017_v4  ;;  %1190 = vmatmul.bf16.gmra.mxu2 %v1017_v4 }
 0x25d   : > { %v718_v46 = vpop.permute.xlu2 %717 }
 0x25e   : > { %v739_v26 = vsub.f32 %v2643_v33, %v718_v46 }
 0x260   : > { %v769_v53 = vmul.f32 1.442695, %v739_v26 }
 0x262   : > { %2039 = vpow2.f32 %v769_v53 }
 0x263   : > { %2041 = vpow2.f32 %v757_v19 }
 0x265   : > { %v693_v22 = vpop.permute.xlu2 %692 }
 0x266   : > { %v734_v27 = vsub.f32 %v2634_v29, %v693_v22  ;;  %v873_v22 = vld [vmem:[#allocation4 + $0x18] sm:$0xff] }
 0x267   : > { %807 = vadd.xlane.f32.xlu1 %v2922_v2 }
 0x268   : > { %v2040_v15 = vpop.eup %2039  ;;  %v759_v6 = vmul.f32 1.442695, %v734_v27  ;;  %v785_v27 = vld [vmem:[#allocation3 + $0x60] sm:$0xff] }
 0x269   : > { %833 = vadd.xlane.f32.xlu2 %v2040_v15  ;;  %v2042_v31 = vpop.eup %2041 }
 0x26a   : > { %2043 = vpow2.f32 %v759_v6 }
 0x26d   : > { %v703_v28 = vpop.permute.xlu0 %702  ;;  %v910_v41 = vpop.permute.xlu2 %909 }
 0x26e   : > { %v736_v14 = vsub.f32 %v2640_v32, %v703_v28 }
 0x26f   : > { %831 = vadd.xlane.f32.xlu1 %v2026_v10 }
 0x270   : > { %v2044_v12 = vpop.eup %2043  ;;  %v763_v29 = vmul.f32 1.442695, %v736_v14 }
 0x271   : > { %811 = vadd.xlane.f32.xlu2 %v2028_v9  ;;  %v1018_v33 = vpack.c.bf16 %v2044_v12, %v2042_v31 }
 0x272   : > { %2045 = vpow2.f32 %v763_v29 }
 0x273   : > { %1146 = vmatmul.bf16.gmra.mxu1 %v1018_v33  ;;  %1195 = vmatmul.bf16.gmra.mxu2 %v1018_v33  ;;  %v801_v33 = vmul.f32 %v2950_v42, %v785_v27  ;;  %v880_v27 = vld [vmem:[#allocation4 + $0xe8] sm:$0xff] }
 0x275   : > { %v2962_v39 = vpop.permute.xlu0 %914  ;;  %v2987_v5 = vpop.permute.xlu2 %929 }
 0x277   : > { %813 = vadd.xlane.f32.xlu1 %v2034_v36 }
 0x278   : > { %v2046_v10 = vpop.eup %2045 }
 0x279   : > { %815 = vadd.xlane.f32.xlu2 %v2032_v17 }
 0x27d   : > { %v2967_v25 = vpop.permute.xlu0 %924  ;;  %v2997_v6 = vpop.permute.xlu2 %944 }
 0x27e   : > { %v723_v23 = vpop.permute.xlu1 %722 }
 0x27f   : > { %819 = vadd.xlane.f32.xlu1 %v2038_v44  ;;  %v740_v2 = vsub.f32 %v2646_v34, %v723_v23 }
 0x281   : > { %v771_v62 = vmul.f32 1.442695, %v740_v2  ;;  %821 = vadd.xlane.f32.xlu2 %v2042_v31  ;;  %v985_v31 = vmul.f32 %v910_v41, %v873_v22  ;;  %v879_v22 = vld [vmem:[#allocation4 + $0x88] sm:$0xff] }
 0x283   : > { %2047 = vpow2.f32 %v771_v62  ;;  %v894_v62 = vld [vmem:[#allocation4 + $0xa8] sm:$0xff] }
 0x285   : > { %v2981_v55 = vpop.permute.xlu0 %939 }
 0x286   : > { %v698_v35 = vpop.permute.xlu1 %697 }
 0x287   : > { %v735_v43 = vsub.f32 %v2637_v30, %v698_v35  ;;  %v3174_v30 = vsub.f32 %v2816_v3, %v2826_v61  ;;  %v3175_v3 = vsub.f32 %v2680_v48, %v2686_v52  ;;  %v872_v52 = vld [vmem:[#allocation4 + $0xd8] sm:$0xff] }
 0x288   : > { %v984_v46 = vmul.f32 %v910_v41, %v872_v52 }
 0x289   : > { %v2048_v9 = vpop.eup %2047  ;;  %v761_v21 = vmul.f32 1.442695, %v735_v43  ;;  %827 = vadd.xlane.f32.xlu2 %v2046_v10  ;;  %v641_v18 = vmul.f32 1.442695, %v3174_v30  ;;  %v639_v61 = vmul.f32 1.442695, %v3175_v3 }
 0x28a   : > { %835 = vadd.xlane.f32.xlu0 %v2048_v9  ;;  %v1021_v57 = vpack.c.bf16 %v2048_v9, %v2040_v15  ;;  %v874_v15 = vld [vmem:[#allocation4 + $0x50] sm:$0xff] }
 0x28b   : > { %2049 = vpow2.f32 %v761_v21  ;;  %v986_v28 = vmul.f32 %v2962_v39, %v874_v15  ;;  %v775_v9 = vld [vmem:[#allocation3 + $0x10] sm:$0xff]  ;;  %v991_v15 = vmul.f32 %v2967_v25, %v879_v22 }
 0x28c   : > { %1161 = vmatmul.bf16.gmra.mxu3 %v1021_v57  ;;  %2051 = vpow2.f32 %v641_v18  ;;  %v876_v21 = vld [vmem:[#allocation4 + $0x30] sm:$0xff]  ;;  %v791_v18 = vmul.f32 %v2828_v63, %v775_v9 }
 0x28d   : > { %2053 = vpow2.f32 %v643_v56  ;;  %v2993_v1 = vpop.permute.xlu0 %954 }
 0x28e   : > { %v905_v50 = vpop.permute.xlu1 %904  ;;  %2055 = vpow2.f32 %v639_v61 }
 0x28f   : > { %v983_v44 = vmul.f32 %v905_v50, %v871_v40 }
 0x291   : > { %v2050_v32 = vpop.eup %2049 }
 0x292   : > { %817 = vadd.xlane.f32.xlu0 %v2036_v59  ;;  %825 = vadd.xlane.f32.xlu1 %v2050_v32  ;;  %v1019_v34 = vpack.c.bf16 %v2046_v10, %v2050_v32  ;;  %v2972_v36 = vpop.eup %2051  ;;  %v875_v10 = vld [vmem:[#allocation4 + $0x68] sm:$0xff] }
 0x293   : > { %v2985_v59 = vpop.eup %2053  ;;  %v987_v42 = vmul.f32 %v2962_v39, %v875_v10  ;;  %v773_v39 = vld [vmem:[#allocation3] sm:$0xff]  ;;  %v787_v10 = vld [vmem:[#allocation3 + $0x70] sm:$0xff] }
 0x294   : > { %1151 = vmatmul.bf16.gmra.mxu1 %v1019_v34  ;;  %1200 = vmatmul.bf16.gmra.mxu2 %v1019_v34  ;;  %v2990_v48 = vpop.eup %2055  ;;  %v789_v52 = vmul.f32 %v2899_v11, %v773_v39 }
 0x296   : > { %v2969_v17 = vpop.permute.xlu1 %919 }
 0x297   : > { %v988_v56 = vmul.f32 %v2969_v17, %v876_v21 }
 0x29a   : > { %823 = vadd.xlane.f32.xlu0 %v2044_v12 }
 0x29c   : > { %1205 = vmatmul.bf16.vlgmr.msra.gmra.mxu3 %v2945_v13  ;;  %v982_v13 = vmul.f32 %v905_v50, %v870_v24  ;;  %v3006_v50 = vpop.permute.xlu2 %959 }
 0x29e   : > { %v2983_v20 = vpop.permute.xlu1 %934 }
 0x2a1   : > { %974 = vperm.xlu2 %1990, %v2972_v36  }
 0x2a6   : > { %v2995_v26 = vpop.permute.xlu1 %949 }
 0x2a8   : > { %v1127_v54 = vpop.f32.mrf.mxu1 }
 0x2a9   : > { %v1216_v60 = vadd.f32 %v1127_v54, %v982_v13  ;;  %v877_v54 = vld [vmem:[#allocation4 + $0x48] sm:$0xff] }
 0x2aa   : > { %v989_v40 = vmul.f32 %v2969_v17, %v877_v54  ;;  %v992_v17 = vmul.f32 %v2987_v5, %v880_v27  ;;  %v886_v27 = vld [vmem:[#allocation4 + $0x38] sm:$0xff] }
 0x2ab   : > { %979 = vperm.xlu1 %1992, %v2985_v59   ;;  %1248 = vst [vmem:[#allocation4 + $0xb0] sm:$0xff] %v1216_v60  ;;  %v878_v60 = vld [vmem:[#allocation4 + $0x80] sm:$0xff] }
 0x2ac   : > { %1210 = vmatmul.bf16.gmra.mxu3 %v1021_v57 }
 0x2ae   : > { %969 = vperm.xlu0 %1991, %v2990_v48  }
 0x2af   : > { %v1176_v4 = vpop.f32.mrf.mxu2  ;;  %v3001_v35 = vpop.permute.xlu1 %964 }
 0x2b0   : > { %v1217_v53 = vadd.f32 %v1176_v4, %v983_v44  ;;  %v1129_v16 = vpop.f32.mrf.mxu1  ;;  %v1006_v57 = vmul.f32 %v3001_v35, %v894_v62  ;;  %v990_v4 = vmul.f32 %v2967_v25, %v878_v60  ;;  %v885_v60 = vld [vmem:[#allocation4 + $0x78] sm:$0xff] }
 0x2b1   : > { %v1218_v19 = vadd.f32 %v1129_v16, %v984_v46 }
 0x2b2   : > { %1249 = vst [vmem:[#allocation4] sm:$0xff] %v1217_v53 }
 0x2b3   : > { %1250 = vst [vmem:[#allocation4 + $0xd8] sm:$0xff] %v1218_v19 }
 0x2b7   : > { %v1178_v12 = vpop.f32.mrf.mxu2 }
 0x2b8   : > { %v1219_v14 = vadd.f32 %v1178_v12, %v985_v31  ;;  %v830_v29 = vpop.xlane.xlu0 %829 }
 0x2b9   : > { %v849_v23 = vadd.f32 %v830_v29, %v801_v33  ;;  %v1132_v2 = vpop.f32.mrf.mxu1 }
 0x2ba   : > { %1251 = vst [vmem:[#allocation4 + $0x18] sm:$0xff] %v1219_v14  ;;  %v1220_v43 = vadd.f32 %v1132_v2, %v986_v28  ;;  %v881_v28 = vld [vmem:[#allocation4 + $0xb8] sm:$0xff]  ;;  %v882_v14 = vld [vmem:[#allocation4 + $0x60] sm:$0xff] }
 0x2bb   : > { %866 = vst.msk [vmem:[#allocation3 + $0x60] sm:$0xff] %vm853_vm1, %v849_v23  ;;  %v993_v29 = vmul.f32 %v2987_v5, %v881_v28  ;;  %v774_v23 = vld [vmem:[#allocation3 + $0x8] sm:$0xff]  ;;  %v994_v62 = vmul.f32 %v2983_v20, %v882_v14  ;;  %v887_v28 = vld [vmem:[#allocation4 + $0x58] sm:$0xff] }
 0x2bc   : > { %1252 = vst [vmem:[#allocation4 + $0x50] sm:$0xff] %v1220_v43  ;;  %v790_v25 = vmul.f32 %v2876_v45, %v774_v23  ;;  %v888_v23 = vld [vmem:[#allocation4 + $0x40] sm:$0xff] }
 0x2be   : > { %v1157_v32 = vpop.f32.mrf.mxu3 }
 0x2bf   : > { %v1240_v34 = vadd.f32 %v1157_v32, %v1006_v57  ;;  %v1181_v30 = vpop.f32.mrf.mxu2 }
 0x2c0   : > { %v1221_v41 = vadd.f32 %v1181_v30, %v987_v42  ;;  %v810_v3 = vpop.xlane.xlu0 %809  ;;  %v883_v42 = vld [vmem:[#allocation4 + $0xf0] sm:$0xff] }
 0x2c1   : > { %1272 = vst [vmem:[#allocation4 + $0xa8] sm:$0xff] %v1240_v34  ;;  %v839_v61 = vadd.f32 %v810_v3, %v791_v18  ;;  %v1134_v24 = vpop.f32.mrf.mxu1  ;;  %v803_v34 = vmul.f32 %v2972_v36, %v787_v10  ;;  %v884_v18 = vld [vmem:[#allocation4 + $0x8] sm:$0xff] }
 0x2c2   : > { %1253 = vst [vmem:[#allocation4 + $0x68] sm:$0xff] %v1221_v41  ;;  %v1222_v13 = vadd.f32 %v1134_v24, %v988_v56  ;;  %v995_v56 = vmul.f32 %v2983_v20, %v883_v42  ;;  %v786_v41 = vld [vmem:[#allocation3 + $0x68] sm:$0xff]  ;;  %v996_v45 = vmul.f32 %v2981_v55, %v884_v18  ;;  %v776_v24 = vld [vmem:[#allocation3 + $0x18] sm:$0xff] }
 0x2c3   : > { %856 = vst.msk [vmem:[#allocation3 + $0x10] sm:$0xff] %vm853_vm1, %v839_v61  ;;  %v802_v54 = vmul.f32 %v2990_v48, %v786_v41  ;;  %v778_v48 = vld [vmem:[#allocation3 + $0x28] sm:$0xff]  ;;  %v788_v42 = vld [vmem:[#allocation3 + $0x78] sm:$0xff] }
 0x2c4   : > { %1254 = vst [vmem:[#allocation4 + $0x30] sm:$0xff] %v1222_v13 }
 0x2c7   : > { %v1183_v63 = vpop.f32.mrf.mxu2  ;;  %v806_v44 = vpop.xlane.xlu2 %805 }
 0x2c8   : > { %v1223_v46 = vadd.f32 %v1183_v63, %v989_v40  ;;  %v837_v53 = vadd.f32 %v806_v44, %v789_v52  ;;  %v792_v52 = vmul.f32 %v2916_v51, %v776_v24  ;;  %v997_v44 = vmul.f32 %v2981_v55, %v885_v60  ;;  %v898_v60 = vld [vmem:[#allocation4 + $0xa0] sm:$0xff] }
 0x2c9   : > { %v1137_v16 = vpop.f32.mrf.mxu1  ;;  %v794_v51 = vmul.f32 %v2890_v37, %v778_v48  ;;  %v998_v55 = vmul.f32 %v2997_v6, %v886_v27 }
 0x2ca   : > { %1255 = vst [vmem:[#allocation4 + $0x48] sm:$0xff] %v1223_v46  ;;  %v1224_v19 = vadd.f32 %v1137_v16, %v990_v4  ;;  %v777_v4 = vld [vmem:[#allocation3 + $0x20] sm:$0xff] }
 0x2cb   : > { %854 = vst.msk [vmem:[#allocation3] sm:$0xff] %vm853_vm1, %v837_v53  ;;  %v793_v16 = vmul.f32 %v2860_v8, %v777_v4 }
 0x2cc   : > { %1256 = vst [vmem:[#allocation4 + $0x80] sm:$0xff] %v1224_v19 }
 0x2cf   : > { %v1186_v31 = vpop.f32.mrf.mxu2 }
 0x2d0   : > { %v1225_v11 = vadd.f32 %v1186_v31, %v991_v15 }
 0x2d1   : > { %v1139_v12 = vpop.f32.mrf.mxu1 }
 0x2d2   : > { %1257 = vst [vmem:[#allocation4 + $0x88] sm:$0xff] %v1225_v11  ;;  %v1226_v33 = vadd.f32 %v1139_v12, %v992_v17  ;;  %v780_v17 = vld [vmem:[#allocation3 + $0x38] sm:$0xff]  ;;  %v781_v12 = vld [vmem:[#allocation3 + $0x40] sm:$0xff] }
 0x2d3   : > { %v796_v8 = vmul.f32 %v2882_v49, %v780_v17  ;;  %v797_v37 = vmul.f32 %v2911_v47, %v781_v12  ;;  %v900_v12 = vld [vmem:[#allocation4 + $0x20] sm:$0xff] }
 0x2d4   : > { %1258 = vst [vmem:[#allocation4 + $0xe8] sm:$0xff] %v1226_v33 }
 0x2d7   : > { %v1188_v2 = vpop.f32.mrf.mxu2 }
 0x2d8   : > { %v1227_v43 = vadd.f32 %v1188_v2, %v993_v29 }
 0x2d9   : > { %v1142_v9 = vpop.f32.mrf.mxu1 }
 0x2da   : > { %1259 = vst [vmem:[#allocation4 + $0xb8] sm:$0xff] %v1227_v43  ;;  %v1228_v21 = vadd.f32 %v1142_v9, %v994_v62  ;;  %v808_v57 = vpop.xlane.xlu1 %807  ;;  %v999_v62 = vmul.f32 %v2997_v6, %v887_v28  ;;  %v1000_v9 = vmul.f32 %v2995_v26, %v888_v23  ;;  %v804_v6 = vmul.f32 %v2985_v59, %v788_v42 }
 0x2db   : > { %v838_v32 = vadd.f32 %v808_v57, %v790_v25 }
 0x2dc   : > { %1260 = vst [vmem:[#allocation4 + $0x60] sm:$0xff] %v1228_v21  ;;  %v834_v30 = vpop.xlane.xlu2 %833  ;;  %v784_v21 = vld [vmem:[#allocation3 + $0x58] sm:$0xff] }
 0x2dd   : > { %855 = vst.msk [vmem:[#allocation3 + $0x8] sm:$0xff] %vm853_vm1, %v838_v32  ;;  %v851_v5 = vadd.f32 %v834_v30, %v803_v34  ;;  %v889_v32 = vld [vmem:[#allocation4 + $0xc8] sm:$0xff]  ;;  %v800_v47 = vmul.f32 %v2926_v38, %v784_v21 }
 0x2de   : > { %v1001_v30 = vmul.f32 %v2995_v26, %v889_v32 }
 0x2df   : > { %868 = vst.msk [vmem:[#allocation3 + $0x70] sm:$0xff] %vm853_vm1, %v851_v5  ;;  %v1191_v3 = vpop.f32.mrf.mxu2 }
 0x2e0   : > { %v1229_v61 = vadd.f32 %v1191_v3, %v995_v56 }
 0x2e1   : > { %v1144_v13 = vpop.f32.mrf.mxu1 }
 0x2e2   : > { %1261 = vst [vmem:[#allocation4 + $0xf0] sm:$0xff] %v1229_v61  ;;  %v1230_v36 = vadd.f32 %v1144_v13, %v996_v45  ;;  %v832_v39 = vpop.xlane.xlu1 %831  ;;  %v779_v45 = vld [vmem:[#allocation3 + $0x30] sm:$0xff] }
 0x2e3   : > { %v850_v40 = vadd.f32 %v832_v39, %v802_v54  ;;  %v783_v61 = vld [vmem:[#allocation3 + $0x50] sm:$0xff]  ;;  %v795_v24 = vmul.f32 %v2934_v58, %v779_v45  ;;  %v782_v39 = vld [vmem:[#allocation3 + $0x48] sm:$0xff] }
 0x2e4   : > { %1262 = vst [vmem:[#allocation4 + $0x8] sm:$0xff] %v1230_v36  ;;  %v812_v20 = vpop.xlane.xlu2 %811  ;;  %v799_v38 = vmul.f32 %v2896_v7, %v783_v61  ;;  %v1159_v36 = vpop.f32.mrf.mxu3 }
 0x2e5   : > { %867 = vst.msk [vmem:[#allocation3 + $0x68] sm:$0xff] %vm853_vm1, %v850_v40  ;;  %v840_v63 = vadd.f32 %v812_v20, %v792_v52  ;;  %v798_v52 = vmul.f32 %v2941_v0, %v782_v39  ;;  %v890_v20 = vld [vmem:[#allocation4 + $0xe0] sm:$0xff] }
 0x2e6   : > { %v1002_v7 = vmul.f32 %v2993_v1, %v890_v20 }
 0x2e7   : > { %857 = vst.msk [vmem:[#allocation3 + $0x18] sm:$0xff] %vm853_vm1, %v840_v63  ;;  %v1193_v46 = vpop.f32.mrf.mxu2 }
 0x2e8   : > { %v1231_v53 = vadd.f32 %v1193_v46, %v997_v44 }
 0x2ea   : > { %1263 = vst [vmem:[#allocation4 + $0x78] sm:$0xff] %v1231_v53  ;;  %v814_v19 = vpop.xlane.xlu1 %813 }
 0x2eb   : > { %v841_v22 = vadd.f32 %v814_v19, %v793_v16  ;;  %v891_v16 = vld [vmem:[#allocation4 + $0x90] sm:$0xff] }
 0x2ec   : > { %v816_v15 = vpop.xlane.xlu2 %815  ;;  %v892_v19 = vld [vmem:[#allocation4 + $0x70] sm:$0xff] }
 0x2ed   : > { %858 = vst.msk [vmem:[#allocation3 + $0x20] sm:$0xff] %vm853_vm1, %v841_v22  ;;  %v842_v31 = vadd.f32 %v816_v15, %v794_v51  ;;  %v1003_v22 = vmul.f32 %v2993_v1, %v891_v16  ;;  %v1004_v27 = vmul.f32 %v3006_v50, %v892_v19 }
 0x2ef   : > { %859 = vst.msk [vmem:[#allocation3 + $0x28] sm:$0xff] %vm853_vm1, %v842_v31 }
 0x2f0   : > { %v1147_v11 = vpop.f32.mrf.mxu1 }
 0x2f1   : > { %v1232_v33 = vadd.f32 %v1147_v11, %v998_v55  ;;  %v893_v55 = vld [vmem:[#allocation4 + $0xc0] sm:$0xff]  ;;  %v895_v11 = vld [vmem:[#allocation4 + $0xd0] sm:$0xff] }
 0x2f2   : > { %v820_v14 = vpop.xlane.xlu1 %819  ;;  %v1007_v28 = vmul.f32 %v3001_v35, %v895_v11  ;;  %v899_v35 = vld [vmem:[#allocation4 + $0xf8] sm:$0xff] }
 0x2f3   : > { %1264 = vst [vmem:[#allocation4 + $0x38] sm:$0xff] %v1232_v33  ;;  %v844_v29 = vadd.f32 %v820_v14, %v796_v8  ;;  %v1005_v8 = vmul.f32 %v3006_v50, %v893_v55 }
 0x2f4   : > { %v822_v2 = vpop.xlane.xlu2 %821 }
 0x2f5   : > { %861 = vst.msk [vmem:[#allocation3 + $0x38] sm:$0xff] %vm853_vm1, %v844_v29  ;;  %v845_v43 = vadd.f32 %v822_v2, %v797_v37  ;;  %v896_v29 = vld [vmem:[#allocation4 + $0x10] sm:$0xff] }
 0x2f6   : > { %v1196_v10 = vpop.f32.mrf.mxu2 }
 0x2f7   : > { %862 = vst.msk [vmem:[#allocation3 + $0x40] sm:$0xff] %vm853_vm1, %v845_v43  ;;  %v1233_v25 = vadd.f32 %v1196_v10, %v999_v62 }
 0x2f8   : > { %v1149_v49 = vpop.f32.mrf.mxu1 }
 0x2f9   : > { %1265 = vst [vmem:[#allocation4 + $0x58] sm:$0xff] %v1233_v25  ;;  %v1234_v57 = vadd.f32 %v1149_v49, %v1000_v9  ;;  %v897_v9 = vld [vmem:[#allocation4 + $0x28] sm:$0xff] }
 0x2fb   : > { %1266 = vst [vmem:[#allocation4 + $0x40] sm:$0xff] %v1234_v57 }
 0x2fc   : > { %v828_v34 = vpop.xlane.xlu2 %827 }
 0x2fd   : > { %v848_v18 = vadd.f32 %v828_v34, %v800_v47  ;;  %v836_v5 = vpop.xlane.xlu0 %835  ;;  %v901_v47 = vld [vmem:[#allocation4 + $0x98] sm:$0xff] }
 0x2fe   : > { %v852_v56 = vadd.f32 %v836_v5, %v804_v6  ;;  %v1198_v41 = vpop.f32.mrf.mxu2 }
 0x2ff   : > { %865 = vst.msk [vmem:[#allocation3 + $0x58] sm:$0xff] %vm853_vm1, %v848_v18  ;;  %v1235_v3 = vadd.f32 %v1198_v41, %v1001_v30 }
 0x300   : > { %869 = vst.msk [vmem:[#allocation3 + $0x78] sm:$0xff] %vm853_vm1, %v852_v56 }
 0x301   : > { %1267 = vst [vmem:[#allocation4 + $0xc8] sm:$0xff] %v1235_v3 }
 0x304   : > { %v975_v40 = vpop.permute.xlu2 %974 }
 0x305   : > { %v818_v13 = vpop.xlane.xlu0 %817  ;;  %v826_v59 = vpop.xlane.xlu1 %825  ;;  %v1010_v44 = vmul.f32 %v975_v40, %v898_v60  ;;  %v1011_v57 = vmul.f32 %v975_v40, %v899_v35 }
 0x306   : > { %v843_v54 = vadd.f32 %v818_v13, %v795_v24  ;;  %v847_v26 = vadd.f32 %v826_v59, %v799_v38 }
 0x308   : > { %860 = vst.msk [vmem:[#allocation3 + $0x30] sm:$0xff] %vm853_vm1, %v843_v54 }
 0x309   : > { %864 = vst.msk [vmem:[#allocation3 + $0x50] sm:$0xff] %vm853_vm1, %v847_v26 }
 0x30d   : > { %v824_v63 = vpop.xlane.xlu0 %823 }
 0x30e   : > { %v846_v58 = vadd.f32 %v824_v63, %v798_v52 }
 0x30f   : > { %v1162_v4 = vpop.f32.mrf.mxu3 }
 0x310   : > { %863 = vst.msk [vmem:[#allocation3 + $0x48] sm:$0xff] %vm853_vm1, %v846_v58  ;;  %v1244_v46 = vadd.f32 %v1162_v4, %v1010_v44 }
 0x311   : > { %v1152_v53 = vpop.f32.mrf.mxu1 }
 0x312   : > { %1276 = vst [vmem:[#allocation4 + $0xa0] sm:$0xff] %v1244_v46  ;;  %v1236_v48 = vadd.f32 %v1152_v53, %v1002_v7 }
 0x314   : > { %1268 = vst [vmem:[#allocation4 + $0xe0] sm:$0xff] %v1236_v48 }
 0x317   : > { %v1164_v51 = vpop.f32.mrf.mxu3  ;;  %v1201_v0 = vpop.f32.mrf.mxu2 }
 0x318   : > { %v1237_v15 = vadd.f32 %v1201_v0, %v1003_v22 }
 0x319   : > { %v1154_v31 = vpop.f32.mrf.mxu1 }
 0x31a   : > { %1269 = vst [vmem:[#allocation4 + $0x90] sm:$0xff] %v1237_v15  ;;  %v1238_v17 = vadd.f32 %v1154_v31, %v1004_v27 }
 0x31c   : > { %1270 = vst [vmem:[#allocation4 + $0x70] sm:$0xff] %v1238_v17 }
 0x31d   : > { %v980_v33 = vpop.permute.xlu1 %979 }
 0x31e   : > { %v1012_v14 = vmul.f32 %v980_v33, %v900_v12  ;;  %v1013_v34 = vmul.f32 %v980_v33, %v901_v47 }
 0x31f   : > { %v1203_v1 = vpop.f32.mrf.mxu2  ;;  %v1206_v37 = vpop.f32.mrf.mxu3 }
 0x320   : > { %v1246_v23 = vadd.f32 %v1164_v51, %v1012_v14  ;;  %v1239_v2 = vadd.f32 %v1203_v1, %v1005_v8  ;;  %v1241_v62 = vadd.f32 %v1206_v37, %v1007_v28  ;;  %v970_v43 = vpop.permute.xlu0 %969 }
 0x321   : > { %v1008_v10 = vmul.f32 %v970_v43, %v896_v29  ;;  %v1009_v49 = vmul.f32 %v970_v43, %v897_v9 }
 0x322   : > { %1278 = vst [vmem:[#allocation4 + $0x20] sm:$0xff] %v1246_v23 }
 0x323   : > { %1271 = vst [vmem:[#allocation4 + $0xc0] sm:$0xff] %v1239_v2  ;;  %v1242_v25 = vadd.f32 %v1159_v36, %v1008_v10 }
 0x324   : > { %1273 = vst [vmem:[#allocation4 + $0xd0] sm:$0xff] %v1241_v62 }
 0x325   : > { %1274 = vst [vmem:[#allocation4 + $0x10] sm:$0xff] %v1242_v25 }
 0x327   : > { %v1208_v21 = vpop.f32.mrf.mxu3 }
 0x328   : > { %v1243_v50 = vadd.f32 %v1208_v21, %v1009_v49 }
 0x32a   : > { %1275 = vst [vmem:[#allocation4 + $0x28] sm:$0xff] %v1243_v50 }
 0x32f   : > { %v1211_v42 = vpop.f32.mrf.mxu3 }
 0x330   : > { %v1245_v32 = vadd.f32 %v1211_v42, %v1011_v57 }
 0x332   : > { %1277 = vst [vmem:[#allocation4 + $0xf8] sm:$0xff] %v1245_v32 }
 0x336   : > { %1299 = sbr.rel (%p1799_p7) target bundleno = 997 (0x3e5), region = 52 }
 0x337   : > { %v1213_v6 = vpop.f32.mrf.mxu3 }
 0x338   : > { %v1247_v30 = vadd.f32 %v1213_v6, %v1013_v34 }
 0x33a   : > { %1279 = vst [vmem:[#allocation4 + $0x98] sm:$0xff] %v1247_v30 }
 0x33b   : > { %v1304_v18 = vld [vmem:[#allocation3 + $0x20] sm:$0xff]  ;;  %v1302_v5 = vld [vmem:[#allocation3 + $0x10] sm:$0xff]  ;;  %v2318_v41 = vmov 0   ;;  %v1305_v3 = vld [vmem:[#allocation3 + $0x28] sm:$0xff] }
 0x33c   : > { %v1300_v56 = vld [vmem:[#allocation3] sm:$0xff]  ;;  %2059 = vset.pattern.permute.xlu2 %v2318_v41  ;;  %2058 = vset.pattern.permute.xlu1 %v2318_v41  ;;  %2060 = vrcp.f32 %v1304_v18  ;;  %v1303_v45 = vld [vmem:[#allocation3 + $0x18] sm:$0xff]  ;;  %v1301_v61 = vld [vmem:[#allocation3 + $0x8] sm:$0xff] }
 0x33d   : > { %2057 = vset.pattern.permute.xlu0 %v2318_v41  ;;  %2062 = vrcp.f32 %v1302_v5  ;;  %v1308_v59 = vld [vmem:[#allocation3 + $0x40] sm:$0xff]  ;;  %v1307_v26 = vld [vmem:[#allocation3 + $0x38] sm:$0xff]  ;;  %v1306_v39 = vld [vmem:[#allocation3 + $0x30] sm:$0xff] }
 0x33e   : > { %2064 = vrcp.f32 %v1300_v56  ;;  %v1311_v40 = vld [vmem:[#allocation3 + $0x58] sm:$0xff]  ;;  %v1310_v20 = vld [vmem:[#allocation3 + $0x50] sm:$0xff]  ;;  %v1309_v44 = vld [vmem:[#allocation3 + $0x48] sm:$0xff] }
 0x33f   : > { %2066 = vrcp.f32 %v1305_v3  ;;  %v1314_v4 = vld [vmem:[#allocation3 + $0x70] sm:$0xff]  ;;  %v1313_v46 = vld [vmem:[#allocation3 + $0x68] sm:$0xff]  ;;  %v1312_v48 = vld [vmem:[#allocation3 + $0x60] sm:$0xff] }
 0x340   : > { %2068 = vrcp.f32 %v1303_v45  ;;  %v1315_v51 = vld [vmem:[#allocation3 + $0x78] sm:$0xff]  ;;  %v1340_v15 = vld [vmem:[#allocation4 + $0x80] sm:$0xff]  ;;  %v1341_v31 = vld [vmem:[#allocation4 + $0x88] sm:$0xff] }
 0x341   : > { %2070 = vrcp.f32 %v1301_v61  ;;  %v1342_v33 = vld [vmem:[#allocation4 + $0xe8] sm:$0xff]  ;;  %v1343_v8 = vld [vmem:[#allocation4 + $0xb8] sm:$0xff]  ;;  %v1354_v9 = vld [vmem:[#allocation4 + $0x70] sm:$0xff] }
 0x342   : > { %v2061_v24 = vpop.eup %2060  ;;  %2072 = vrcp.f32 %v1308_v59  ;;  %v1348_v37 = vld [vmem:[#allocation4 + $0x38] sm:$0xff]  ;;  %v1355_v25 = vld [vmem:[#allocation4 + $0xc0] sm:$0xff]  ;;  %v1336_v49 = vld [vmem:[#allocation4 + $0x50] sm:$0xff] }
 0x343   : > { %v2063_v38 = vpop.eup %2062  ;;  %1386 = vperm.xlu2 %2059, %v2061_v24   ;;  %2074 = vrcp.f32 %v1307_v26  ;;  %v1349_v23 = vld [vmem:[#allocation4 + $0x58] sm:$0xff]  ;;  %v1337_v21 = vld [vmem:[#allocation4 + $0x68] sm:$0xff]  ;;  %v1332_v35 = vld [vmem:[#allocation4 + $0xb0] sm:$0xff] }
 0x344   : > { %v2065_v13 = vpop.eup %2064  ;;  %1376 = vperm.xlu1 %2058, %v2063_v38   ;;  %2076 = vrcp.f32 %v1306_v39  ;;  %v1333_v57 = vld [vmem:[#allocation4] sm:$0xff]  ;;  %v1361_v61 = vld [vmem:[#allocation4 + $0xf8] sm:$0xff]  ;;  %v1338_v24 = vld [vmem:[#allocation4 + $0x30] sm:$0xff] }
 0x345   : > { %1366 = vperm.xlu0 %2057, %v2065_v13   ;;  %v2067_v54 = vpop.eup %2066  ;;  %2078 = vrcp.f32 %v1311_v40  ;;  %v1360_v45 = vld [vmem:[#allocation4 + $0xa0] sm:$0xff]  ;;  %v1339_v38 = vld [vmem:[#allocation4 + $0x48] sm:$0xff]  ;;  %v1334_v59 = vld [vmem:[#allocation4 + $0xd8] sm:$0xff] }
 0x346   : > { %v2069_v36 = vpop.eup %2068  ;;  %2080 = vrcp.f32 %v1310_v20 }
 0x347   : > { %v2071_v60 = vpop.eup %2070  ;;  %2082 = vrcp.f32 %v1309_v44 }
 0x348   : > { %v2073_v52 = vpop.eup %2072  ;;  %2084 = vrcp.f32 %v1314_v4 }
 0x349   : > { %v2075_v63 = vpop.eup %2074  ;;  %2086 = vrcp.f32 %v1313_v46  ;;  %v1347_v46 = vld [vmem:[#allocation4 + $0x78] sm:$0xff] }
 0x34a   : > { %v2077_v58 = vpop.eup %2076  ;;  %2088 = vrcp.f32 %v1312_v48  ;;  %v1345_v48 = vld [vmem:[#allocation4 + $0xf0] sm:$0xff] }
 0x34b   : > { %1391 = vperm.xlu2 %2059, %v2067_v54   ;;  %v2079_v7 = vpop.eup %2078  ;;  %2090 = vrcp.f32 %v1315_v51  ;;  %v1335_v54 = vld [vmem:[#allocation4 + $0x18] sm:$0xff] }
 0x34c   : > { %1381 = vperm.xlu1 %2058, %v2069_v36   ;;  %v2081_v53 = vpop.eup %2080 }
 0x34d   : > { %1371 = vperm.xlu0 %2057, %v2071_v60   ;;  %v2083_v16 = vpop.eup %2082 }
 0x34e   : > { %v2085_v19 = vpop.eup %2084 }
 0x34f   : > { %v2087_v22 = vpop.eup %2086 }
 0x350   : > { %v2089_v0 = vpop.eup %2088 }
 0x351   : > { %v2091_v27 = vpop.eup %2090 }
 0x353   : > { %1406 = vperm.xlu2 %2059, %v2073_v52  }
 0x354   : > { %1401 = vperm.xlu1 %2058, %v2075_v63  }
 0x355   : > { %1396 = vperm.xlu0 %2057, %v2077_v58  }
 0x35b   : > { %1421 = vperm.xlu2 %2059, %v2079_v7   ;;  %v1346_v7 = vld [vmem:[#allocation4 + $0x8] sm:$0xff] }
 0x35c   : > { %1416 = vperm.xlu1 %2058, %v2081_v53   ;;  %v1344_v53 = vld [vmem:[#allocation4 + $0x60] sm:$0xff] }
 0x35d   : > { %1411 = vperm.xlu0 %2057, %v2083_v16  }
 0x363   : > { %1436 = vperm.xlu2 %2059, %v2085_v19  }
 0x364   : > { %1431 = vperm.xlu1 %2058, %v2087_v22  }
 0x365   : > { %1426 = vperm.xlu0 %2057, %v2089_v0  }
 0x36d   : > { %1441 = vperm.xlu0 %2057, %v2091_v27  }
 0x39d   : > { %v1387_v17 = vpop.permute.xlu2 %1386 }
 0x39e   : > { %v1452_v55 = vmul.f32 %v1387_v17, %v1340_v15  ;;  %v1453_v11 = vmul.f32 %v1387_v17, %v1341_v31  ;;  %v1352_v17 = vld [vmem:[#allocation4 + $0xe0] sm:$0xff] }
 0x3a0   : > { %v1480_v12 = vpack.c.bf16 %v1453_v11, %v1452_v55  ;;  %v1353_v55 = vld [vmem:[#allocation4 + $0x90] sm:$0xff]  ;;  %v1350_v11 = vld [vmem:[#allocation4 + $0x40] sm:$0xff] }
 0x3a2   : > { %1496 = vst [vmem:[%s2550_s24 + $0x20] sm:$0xff] %v1480_v12  ;;  %v1351_v12 = vld [vmem:[#allocation4 + $0xc8] sm:$0xff] }
 0x3a5   : > { %v1392_v28 = vpop.permute.xlu2 %1391 }
 0x3a6   : > { %v1454_v14 = vmul.f32 %v1392_v28, %v1342_v33  ;;  %v1455_v29 = vmul.f32 %v1392_v28, %v1343_v8 }
 0x3a8   : > { %v1481_v1 = vpack.c.bf16 %v1455_v29, %v1454_v14 }
 0x3aa   : > { %1497 = vst [vmem:[%s2550_s24 + $0x28] sm:$0xff] %v1481_v1 }
 0x3ad   : > { %v1407_v2 = vpop.permute.xlu2 %1406 }
 0x3ae   : > { %v1460_v62 = vmul.f32 %v1407_v2, %v1348_v37  ;;  %v1461_v43 = vmul.f32 %v1407_v2, %v1349_v23  ;;  %v1358_v2 = vld [vmem:[#allocation4 + $0x10] sm:$0xff] }
 0x3b0   : > { %v1484_v10 = vpack.c.bf16 %v1461_v43, %v1460_v62  ;;  %v1359_v62 = vld [vmem:[#allocation4 + $0x28] sm:$0xff] }
 0x3b1   : > { %v1356_v43 = vld [vmem:[#allocation4 + $0xa8] sm:$0xff] }
 0x3b2   : > { %1500 = vst [vmem:[%s2550_s24 + $0x40] sm:$0xff] %v1484_v10  ;;  %v1357_v10 = vld [vmem:[#allocation4 + $0xd0] sm:$0xff] }
 0x3b5   : > { %v1422_v50 = vpop.permute.xlu2 %1421 }
 0x3b6   : > { %v1466_v42 = vmul.f32 %v1422_v50, %v1354_v9  ;;  %v1467_v32 = vmul.f32 %v1422_v50, %v1355_v25  ;;  %v1377_v47 = vpop.permute.xlu1 %1376 }
 0x3b7   : > { %v1448_v34 = vmul.f32 %v1377_v47, %v1336_v49  ;;  %v1449_v6 = vmul.f32 %v1377_v47, %v1337_v21  ;;  %v1367_v30 = vpop.permute.xlu0 %1366  ;;  %v1363_v47 = vld [vmem:[#allocation4 + $0x98] sm:$0xff] }
 0x3b8   : > { %v1487_v18 = vpack.c.bf16 %v1467_v32, %v1466_v42  ;;  %v1444_v5 = vmul.f32 %v1367_v30, %v1332_v35  ;;  %v1445_v56 = vmul.f32 %v1367_v30, %v1333_v57  ;;  %v1362_v32 = vld [vmem:[#allocation4 + $0x20] sm:$0xff] }
 0x3b9   : > { %v1478_v41 = vpack.c.bf16 %v1449_v6, %v1448_v34 }
 0x3ba   : > { %1503 = vst [vmem:[%s2550_s24 + $0x58] sm:$0xff] %v1487_v18  ;;  %v1476_v3 = vpack.c.bf16 %v1445_v56, %v1444_v5 }
 0x3bb   : > { %1494 = vst [vmem:[%s2550_s24 + $0x10] sm:$0xff] %v1478_v41 }
 0x3bc   : > { %1492 = vst [vmem:[%s2550_s24] sm:$0xff] %v1476_v3 }
 0x3bd   : > { %v1437_v13 = vpop.permute.xlu2 %1436 }
 0x3be   : > { %v1472_v26 = vmul.f32 %v1437_v13, %v1360_v45  ;;  %v1473_v36 = vmul.f32 %v1437_v13, %v1361_v61  ;;  %v1382_v39 = vpop.permute.xlu1 %1381 }
 0x3bf   : > { %v1450_v60 = vmul.f32 %v1382_v39, %v1338_v24  ;;  %v1451_v40 = vmul.f32 %v1382_v39, %v1339_v38  ;;  %v1372_v52 = vpop.permute.xlu0 %1371 }
 0x3c0   : > { %v1490_v20 = vpack.c.bf16 %v1473_v36, %v1472_v26  ;;  %v1446_v63 = vmul.f32 %v1372_v52, %v1334_v59  ;;  %v1447_v44 = vmul.f32 %v1372_v52, %v1335_v54 }
 0x3c1   : > { %v1479_v58 = vpack.c.bf16 %v1451_v40, %v1450_v60 }
 0x3c2   : > { %1506 = vst [vmem:[%s2550_s24 + $0x70] sm:$0xff] %v1490_v20  ;;  %v1477_v4 = vpack.c.bf16 %v1447_v44, %v1446_v63 }
 0x3c3   : > { %1495 = vst [vmem:[%s2550_s24 + $0x18] sm:$0xff] %v1479_v58 }
 0x3c4   : > { %1493 = vst [vmem:[%s2550_s24 + $0x8] sm:$0xff] %v1477_v4 }
 0x3c6   : > { %v1402_v16 = vpop.permute.xlu1 %1401 }
 0x3c7   : > { %v1458_v19 = vmul.f32 %v1402_v16, %v1346_v7  ;;  %v1459_v22 = vmul.f32 %v1402_v16, %v1347_v46  ;;  %v1397_v51 = vpop.permute.xlu0 %1396 }
 0x3c8   : > { %v1456_v0 = vmul.f32 %v1397_v51, %v1344_v53  ;;  %v1457_v27 = vmul.f32 %v1397_v51, %v1345_v48 }
 0x3c9   : > { %v1483_v15 = vpack.c.bf16 %v1459_v22, %v1458_v19 }
 0x3ca   : > { %v1482_v31 = vpack.c.bf16 %v1457_v27, %v1456_v0 }
 0x3cb   : > { %1499 = vst [vmem:[%s2550_s24 + $0x38] sm:$0xff] %v1483_v15 }
 0x3cc   : > { %1498 = vst [vmem:[%s2550_s24 + $0x30] sm:$0xff] %v1482_v31 }
 0x3ce   : > { %v1417_v33 = vpop.permute.xlu1 %1416 }
 0x3cf   : > { %v1464_v8 = vmul.f32 %v1417_v33, %v1352_v17  ;;  %v1465_v28 = vmul.f32 %v1417_v33, %v1353_v55  ;;  %v1412_v14 = vpop.permute.xlu0 %1411 }
 0x3d0   : > { %v1462_v29 = vmul.f32 %v1412_v14, %v1350_v11  ;;  %v1463_v1 = vmul.f32 %v1412_v14, %v1351_v12 }
 0x3d1   : > { %v1486_v37 = vpack.c.bf16 %v1465_v28, %v1464_v8 }
 0x3d2   : > { %v1485_v23 = vpack.c.bf16 %v1463_v1, %v1462_v29 }
 0x3d3   : > { %1502 = vst [vmem:[%s2550_s24 + $0x50] sm:$0xff] %v1486_v37 }
 0x3d4   : > { %1501 = vst [vmem:[%s2550_s24 + $0x48] sm:$0xff] %v1485_v23 }
 0x3d6   : > { %v1432_v9 = vpop.permute.xlu1 %1431 }
 0x3d7   : > { %v1470_v25 = vmul.f32 %v1432_v9, %v1358_v2  ;;  %v1471_v49 = vmul.f32 %v1432_v9, %v1359_v62  ;;  %v1427_v21 = vpop.permute.xlu0 %1426 }
 0x3d8   : > { %v1468_v50 = vmul.f32 %v1427_v21, %v1356_v43  ;;  %v1469_v35 = vmul.f32 %v1427_v21, %v1357_v10 }
 0x3d9   : > { %v1489_v57 = vpack.c.bf16 %v1471_v49, %v1470_v25 }
 0x3da   : > { %v1488_v42 = vpack.c.bf16 %v1469_v35, %v1468_v50 }
 0x3db   : > { %1505 = vst [vmem:[%s2550_s24 + $0x68] sm:$0xff] %v1489_v57 }
 0x3dc   : > { %1504 = vst [vmem:[%s2550_s24 + $0x60] sm:$0xff] %v1488_v42 }
 0x3df   : > { %v1442_v34 = vpop.permute.xlu0 %1441 }
 0x3e0   : > { %v1474_v6 = vmul.f32 %v1442_v34, %v1362_v32  ;;  %v1475_v30 = vmul.f32 %v1442_v34, %v1363_v47 }
 0x3e2   : > { %v1491_v18 = vpack.c.bf16 %v1475_v30, %v1474_v6 }
 0x3e4   : > { %1507 = vst [vmem:[%s2550_s24 + $0x78] sm:$0xff] %v1491_v18 }
 0x3e5 PF: > { %s3176_s18 = sld [smem:[#allocation16_spill]]  ;;  %s1522_s23 = sshll.u32 %s2550_s24, 4  ;;  %s1523_s23 = int_to_ptr.vmem [resolvable:$true] %s1522_s23 }
 0x3e6   : > { %s3178_s30 = sld [smem:[#allocation26_spill]]  ;;  %s1509_s5 = scalar_lea.sflag [#allocation7], %s2529_s6 }
 0x3eb   : > { %s1842_s11 = sshll.u32 %s3176_s18, 7 }
 0x3ec   : > { %s1521_s3 = scalar_lea.hbm %s3178_s30, %s1842_s11  ;;  %s2202_s0 = scalar_lea.hbm %s3178_s30, 256 }
 0x3ed   : > { %s1524_s8 = sshll.u32 %s1521_s3, 4  ;;  %s1525_s8 = int_to_ptr.hbm [resolvable:$true] %s1524_s8 }
 0x3ee   : > { %s2196_s9 = sshra.s32 %s1525_s8, 4  ;;  %s2197_s9 = int_to_ptr.hbm [resolvable:$true] %s2196_s9 }
 0x3ef   : > { %s2198_s1 = scalar_lea.hbm %s2197_s9, 128  ;;  %p2203_p4 = scmp.lt.s32.totalorder %s2197_s9, %s3178_s30 }
 0x3f0   : > { %p2199_p10 = scmp.ne.s32.totalorder %s2197_s9, %s2198_s1  ;;  %p2204_p6 = scmp.lt.s32.totalorder %s2202_s0, %s2198_s1 }
 0x3f2   : > { %p2200_p12 = pnand %p2199_p10, %p2491_p0  ;;  %p2205_p8 = por %p2204_p6, %p2203_p4 }
 0x3f4   : > { %p2201_p2 = pneg %p2200_p12 }
 0x3f6   : > { %p2206_p1 = pnand %p2205_p8, %p2201_p2 }
 0x3f8   : > { %2209 = shalt.err (!%p2206_p1)
}
 0x3f9   : > { %s2319_s6 = smov 128   ;;  %s2320_s27 = smov 8  }
 0x3fa   : > { %1873 = dma.vmem_to_hbm [thread:$0]  (%p2491_p0), %s1523_s23, 2048, %s1525_s8, %s1509_s5, %s2319_s6, %s2319_s6, %s2320_s27  }
 0x3fb PF: > { %p1890_p9 = scmp.ge.s32.totalorder %s2308_s22, 2  ;;  %s1539_s12 = sand.u32 1, %s2280_s15  }
 0x3fc   : > { %s1540_s28 = scalar_lea.sflag [#allocation7], %s1539_s12 }
 0x3fd   : > { %p1886_p13 = pnand %p1890_p9, %p2503_p3 }
 0x3ff   : > { %p1887_p11 = pneg %p1886_p13 }
 0x401   : > { %2263 = dma.done.wait (%p1887_p11), %s1540_s28, 2048  }
 0x402   : > { %2265 = vsyncadd (%p1887_p11), %s1540_s28, 4294965248  ;;  %s22_s22 = sadd.s32 1, %s2308_s22   ;;  %s3180_s10 = sld [smem:[#allocation19_spill]] }
 0x403   : > { %p19_p5 = scmp.ge.s32.totalorder %s22_s22, 8   ;;  %s3181_s24 = sld [smem:[#allocation15_spill]] }
 0x404   : > { %s3182_s17 = sld [smem:[#allocation22_spill]]  ;;  %s3186_s12 = smov %s2272_s13 }
 0x405   : > { %s3183_s19 = sld [smem:[#allocation17_spill]]  ;;  %s3187_s13 = smov %s2276_s14 }
 0x406   : > { %s3184_s7 = sld [smem:[#allocation18_spill]]  ;;  %s3189_s15 = smov %s2284_s16 }
 0x407   : > { %s3185_s21 = sld [smem:[#allocation20_spill]]  ;;  %s3191_s18 = smov %s2300_s20 }
 0x408   : > { %s3188_s14 = smov %s3180_s10  ;;  %21 = sbr.rel (!%p19_p5) target bundleno = 15 (0xf), region = 109 }
 0x409   : > { %s3190_s16 = smov %s3181_s24 }
 0x40c   : > { %s3192_s20 = smov %s3184_s7 }
 0x40d   :  { %1546 = vsyncpa [#allocation6], 1 }
 0x40e   :  { %1548 = vsyncpa [#allocation6 + $0x1], 1 }
 0x40f   :  { %1549 = vsyncpa [#allocation9], 1 }
 0x410   :  { %1551 = vsyncpa [#allocation9 + $0x1], 1 }
 0x411   :  { %1552 = vsyncpa [#allocation7], 1 }
 0x412   :  { %1554 = vsyncpa [#allocation7 + $0x1], 1 }

</bundles_post_ra>
